<compile_context>
chip_gen: v6e
topology: v6e:2x2x1
jax: 0.10.0
libtpu: 0.0.40
codegen_flags: <defaults>
</compile_context>

<pallas_src>
import functools

import jax
import jax.numpy as jnp
from jax.experimental import pallas as pl
from jax.experimental.pallas import tpu as pltpu

SELU_ALPHA = 1.6732632423543772
SELU_LAMBDA = 1.0507009873554805
BN_EPS = 0.001

_BF16 = jnp.bfloat16
_F32 = jnp.float32


def _selu(v):
    # Clamp the exp argument so the unselected branch never produces inf.
    return SELU_LAMBDA * jnp.where(
        v > 0, v, SELU_ALPHA * (jnp.exp(jnp.minimum(v, 0.0)) - 1.0))


def _round_up(n, m):
    return ((n + m - 1) // m) * m


def _vmem_budget_bytes():
    """Generation-aware VMEM budget: ~3/4 of physical capacity (96 MiB on
    v5e/v6e, 48 MiB on v7x), with a conservative fallback."""
    try:
        cap = int(pltpu.get_tpu_info().vmem_capacity_bytes)
    except Exception:
        cap = 64 << 20  # v7x per-core VMEM; safe lower bound
    return int(max(cap * 3 // 4, 24 << 20))


# ----------------------------------------------------------------------------
# Kernel
# ----------------------------------------------------------------------------
def batch_vae_kernel(
    x_ref, dbias_ref, eps_ref,
    w1_ref, b1_ref, w2_ref, b2_ref, wmv_ref, bmv_ref,
    w4z_ref, w5_ref, b5_ref, wo_ref, bo_ref,
    dec_ref, zms_ref,
    *, enc_dim, enc_pad,
):
    # ---- Encoder: x -> h1 -> h2 -> [means | log_vars] ----
    x = x_ref[...].astype(_BF16)
    h1 = _selu(jnp.dot(x, w1_ref[...], preferred_element_type=_F32)
               + b1_ref[...])
    # Dropout(p=0.1) layers are identity in eval mode.
    h2 = _selu(jnp.dot(h1.astype(_BF16), w2_ref[...], preferred_element_type=_F32)
               + b2_ref[...])
    mv = jnp.dot(h2.astype(_BF16), wmv_ref[...], preferred_element_type=_F32) \
        + bmv_ref[...]
    means = mv[:, :enc_dim]
    log_vars = mv[:, enc_dim:]
    stdev = jnp.exp(0.5 * log_vars) + 0.0001
    z = means + stdev * eps_ref[...]           # Normal(means, stdev).rsample()

    # ---- Decoder ----
    # cat([z, b]) @ W4 == z @ W4[:enc] + (b @ W4[enc:] + b4); the second term
    # (a K=4 matmul) is folded into dbias in the wrapper.
    d4 = _selu(jnp.dot(z.astype(_BF16), w4z_ref[...], preferred_element_type=_F32)
               + dbias_ref[...])
    d5 = _selu(jnp.dot(d4.astype(_BF16), w5_ref[...], preferred_element_type=_F32)
               + b5_ref[...])
    dec = jnp.maximum(
        jnp.dot(d5.astype(_BF16), wo_ref[...], preferred_element_type=_F32)
        + bo_ref[...], 0.0)

    dec_ref[...] = dec.astype(dec_ref.dtype)   # bf16 writeback (halves HBM bytes)

    # Pack [z | means | stdev] into one lane-dense block: each slot padded to a
    # 128-lane multiple so the store is a single unmasked vst.
    pad = enc_pad - enc_dim
    if pad:
        zeros = jnp.zeros((z.shape[0], pad), _F32)
        packed = jnp.concatenate([z, zeros, means, zeros, stdev, zeros], axis=1)
    else:
        packed = jnp.concatenate([z, means, stdev], axis=1)
    zms_ref[...] = packed


# ----------------------------------------------------------------------------
# Parameter init (torch.nn.Linear defaults, eval-mode BatchNorm folded)
# ----------------------------------------------------------------------------
def _linear_init(key, fan_in, fan_out):
    kw, kb = jax.random.split(key)
    bound = 1.0 / jnp.sqrt(jnp.array(fan_in, jnp.float32))
    w = jax.random.uniform(kw, (fan_in, fan_out), jnp.float32, -bound, bound)
    b = jax.random.uniform(kb, (1, fan_out), jnp.float32, -bound, bound)
    return w, b


def _fold_bn(w, b, gamma, beta, running_mean, running_var, eps=BN_EPS):
    scale = gamma / jnp.sqrt(running_var + eps)
    shift = beta - running_mean * scale
    return w * scale[None, :], b * scale[None, :] + shift[None, :]


def init_params(key, n_genes, f1_dim, f2_dim, enc_dim, n_batch):
    ks = jax.random.split(key, 8)
    p = {}
    # Encoder
    w1, b1 = _linear_init(ks[0], n_genes, f1_dim)
    p["w1"], p["b1"] = _fold_bn(w1, b1, jnp.ones(f1_dim), jnp.zeros(f1_dim),
                                jnp.zeros(f1_dim), jnp.ones(f1_dim))
    w2, b2 = _linear_init(ks[1], f1_dim, f2_dim)
    p["w2"], p["b2"] = _fold_bn(w2, b2, jnp.ones(f2_dim), jnp.zeros(f2_dim),
                                jnp.zeros(f2_dim), jnp.ones(f2_dim))
    p["wm"], p["bm"] = _linear_init(ks[2], f2_dim, enc_dim)
    p["wv"], p["bv"] = _linear_init(ks[3], f2_dim, enc_dim)
    p["wmv"] = jnp.concatenate([p["wm"], p["wv"]], axis=1)   # fused means|log_vars
    p["bmv"] = jnp.concatenate([p["bm"], p["bv"]], axis=1)
    # Decoder
    wb, bb = _linear_init(ks[4], n_batch, n_batch)
    p["wb"], p["bb"] = _fold_bn(wb, bb, jnp.ones(n_batch), jnp.zeros(n_batch),
                                jnp.zeros(n_batch), jnp.ones(n_batch))
    w4, b4 = _linear_init(ks[5], enc_dim + n_batch, f2_dim)
    w4, b4 = _fold_bn(w4, b4, jnp.ones(f2_dim), jnp.zeros(f2_dim),
                      jnp.zeros(f2_dim), jnp.ones(f2_dim))
    p["w4z"], p["w4b"], p["b4"] = w4[:enc_dim], w4[enc_dim:], b4
    w5, b5 = _linear_init(ks[6], f2_dim, f1_dim)
    p["w5"], p["b5"] = _fold_bn(w5, b5, jnp.ones(f1_dim), jnp.zeros(f1_dim),
                                jnp.zeros(f1_dim), jnp.ones(f1_dim))
    p["wo"], p["bo"] = _linear_init(ks[7], f1_dim, n_genes)
    return p


# ----------------------------------------------------------------------------
# Forward wrapper
# ----------------------------------------------------------------------------
@functools.partial(jax.jit, static_argnames=("tb",))
def batch_vae_forward(x, batch, eps, params, tb=None):
    B, n_genes = x.shape
    enc_dim = eps.shape[1]
    f1_dim = params["w1"].shape[1]
    f2_dim = params["w2"].shape[1]

    enc_pad = _round_up(enc_dim, 128)
    ng_pad = _round_up(n_genes, 128)

    # ---- hoisted tiny ops (fused by XLA; pure overhead on the MXU) ----
    # b = SELU(BN(fcb(batch))); fold b @ W4[enc:] + b4 into a per-row bias.
    b_act = _selu(batch @ params["wb"] + params["bb"])
    dbias = (b_act @ params["w4b"] + params["b4"]).astype(_F32)

    # Matmul weights in bf16 (half DMA + VMEM residency); biases in f32.
    # Output projection padded to a lane-dense (128-multiple) gene dim.
    wo, bo = params["wo"], params["bo"]
    if ng_pad != n_genes:
        wo = jnp.pad(wo, ((0, 0), (0, ng_pad - n_genes)))
        bo = jnp.pad(bo, ((0, 0), (0, ng_pad - n_genes)))
    weights = [
        params["w1"].astype(_BF16), params["b1"].astype(_F32),
        params["w2"].astype(_BF16), params["b2"].astype(_F32),
        params["wmv"].astype(_BF16), params["bmv"].astype(_F32),
        params["w4z"].astype(_BF16),
        params["w5"].astype(_BF16), params["b5"].astype(_F32),
        wo.astype(_BF16), bo.astype(_F32),
    ]
    weight_bytes = sum(int(w.size) * w.dtype.itemsize for w in weights)

    # ---- batch tile: multiple of 16, <=128 rows, targeting >=4 grid steps ----
    if tb is None:
        tb = int(min(128, max(16, _round_up(pl.cdiv(max(B, 16), 4), 16))))
    else:
        tb = int(max(8, _round_up(int(tb), 8)))

    budget = _vmem_budget_bytes()

    def _tile_bytes(t):
        in_b = t * (n_genes * x.dtype.itemsize + f2_dim * 4 + enc_dim * 4)
        out_b = t * (ng_pad * 2 + 3 * enc_pad * 4)
        act_b = t * (f1_dim + f2_dim + 4 * enc_dim + ng_pad) * 4
        return 2 * (in_b + out_b) + act_b       # row blocks are double-buffered

    while tb > 16 and weight_bytes + _tile_bytes(tb) + (4 << 20) > budget:
        tb = max(16, tb // 2)

    # cdiv grid: partial last tile is masked by Pallas -> no jnp.pad / no slicing.
    grid = (pl.cdiv(B, tb),)

    def row_spec(d):
        return pl.BlockSpec((tb, d), lambda i: (i, 0))

    def const_spec(a):
        r, c = a.shape
        # Grid-invariant block: single-buffer it (default 2x buffering is waste).
        return pl.BlockSpec((r, c), lambda i: (0, 0), pipeline_mode=pl.Buffered(1))

    in_specs = [row_spec(n_genes), row_spec(f2_dim), row_spec(enc_dim)] + \
               [const_spec(w) for w in weights]
    out_specs = (row_spec(ng_pad), row_spec(3 * enc_pad))
    out_shape = (
        jax.ShapeDtypeStruct((B, ng_pad), _BF16),      # dec (bf16 writeback)
        jax.ShapeDtypeStruct((B, 3 * enc_pad), _F32),  # packed [z | means | stdev]
    )

    flops = 2 * B * (n_genes * f1_dim + f1_dim * f2_dim + f2_dim * 2 * enc_dim
                     + enc_dim * f2_dim + f2_dim * f1_dim + f1_dim * ng_pad)
    transcendentals = B * (2 * f1_dim + 2 * f2_dim + enc_dim)
    io_bytes = weight_bytes + B * (n_genes * x.dtype.itemsize + f2_dim * 4
                                   + enc_dim * 4 + ng_pad * 2 + 3 * enc_pad * 4)
    cost = pl.CostEstimate(flops=int(flops), transcendentals=int(transcendentals),
                           bytes_accessed=int(io_bytes))

    kernel = functools.partial(batch_vae_kernel, enc_dim=enc_dim, enc_pad=enc_pad)

    dec, zms = pl.pallas_call(
        kernel,
        out_shape=out_shape,
        grid_spec=pltpu.PrefetchScalarGridSpec(
            num_scalar_prefetch=0,
            grid=grid,
            in_specs=in_specs,
            out_specs=out_specs,
        ),
        compiler_params=pltpu.CompilerParams(
            dimension_semantics=("parallel",),
            vmem_limit_bytes=int(budget)),
        cost_estimate=cost,
    )(x, dbias, eps, *weights)

    if ng_pad != n_genes:
        # TODO(synk): at production sizes keep genes 128-padded end-to-end
        # instead of slicing (this slice copies dec once).
        dec = dec[:, :n_genes]
    z = zms[:, :enc_dim]
    means = zms[:, enc_pad:enc_pad + enc_dim]
    stdev = zms[:, 2 * enc_pad:2 * enc_pad + enc_dim]
    return dec, z, means, stdev


# ----------------------------------------------------------------------------
# Pure-JAX reference (same numerics: bf16 matmul operands, f32 accumulation)
# ----------------------------------------------------------------------------
def batch_vae_reference(x, batch, eps, p):
    def mm(a, w):
        return jnp.dot(a.astype(_BF16), w.astype(_BF16),
                       preferred_element_type=_F32)
    h1 = _selu(mm(x, p["w1"]) + p["b1"])
    h2 = _selu(mm(h1, p["w2"]) + p["b2"])
    means = mm(h2, p["wm"]) + p["bm"]
    log_vars = mm(h2, p["wv"]) + p["bv"]
    stdev = jnp.exp(0.5 * log_vars) + 0.0001
    z = means + stdev * eps
    b = _selu(batch @ p["wb"] + p["bb"])
    dbias = b @ p["w4b"] + p["b4"]
    d4 = _selu(mm(z, p["w4z"]) + dbias)
    d5 = _selu(mm(d4, p["w5"]) + p["b5"])
    dec = jnp.maximum(mm(d5, p["wo"]) + p["bo"], 0.0)
    return dec, z, means, stdev


def _check_close(name, got, want, atol, rtol):
    got = jnp.asarray(got, _F32)
    want = jnp.asarray(want, _F32)
    if not bool(jnp.allclose(got, want, atol=atol, rtol=rtol)):
        raise AssertionError(
            f"{name}: max abs err = {float(jnp.max(jnp.abs(got - want)))}")


def _run_case(n_genes, f1_dim, f2_dim, enc_dim, n_batch, B, case_id):
    key = jax.random.fold_in(jax.random.PRNGKey(0), case_id)
    k_par, k_x, k_b, k_eps = jax.random.split(key, 4)
    params = init_params(k_par, n_genes, f1_dim, f2_dim, enc_dim, n_batch)
    x = jax.random.normal(k_x, (B, n_genes), _F32)
    batch_idx = jax.random.randint(k_b, (B,), 0, n_batch)
    batch = jax.nn.one_hot(batch_idx, n_batch, dtype=_F32)   # source one-hot
    eps = jax.random.normal(k_eps, (B, enc_dim), _F32)       # rsample noise

    dec, z, means, stdev = batch_vae_forward(x, batch, eps, params)
    jax.block_until_ready((dec, z, means, stdev))

    ref_dec, ref_z, ref_m, ref_s = batch_vae_reference(x, batch, eps, params)
    assert dec.shape == (B, n_genes)
    assert z.shape == (B, enc_dim) and means.shape == (B, enc_dim)
    assert stdev.shape == (B, enc_dim)
    _check_close("dec", dec, ref_dec, atol=3e-2, rtol=3e-2)   # dec stored in bf16
    _check_close("z", z, ref_z, atol=5e-3, rtol=5e-3)
    _check_close("means", means, ref_m, atol=5e-3, rtol=5e-3)
    _check_close("stdev", stdev, ref_s, atol=5e-3, rtol=5e-3)


if __name__ == "__main__":
    # Main case: B=200 is not a tile multiple (exercises the masked partial
    # last tile — no wrapper pad/slice copies); tb auto-picks 64 -> 4 grid steps.
    _run_case(n_genes=256, f1_dim=128, f2_dim=64, enc_dim=16, n_batch=4,
              B=200, case_id=0)
    # Second case: non-128-aligned gene count exercises the lane-padded dec path
    # plus a 3-step grid with a 5-row final tile.
    _run_case(n_genes=190, f1_dim=64, f2_dim=32, enc_dim=8, n_batch=3,
              B=37, case_id=1)
    print("KERNEL_OK")
</pallas_src>

<mosaic_0001>
module attributes {stable_mosaic.version = 11 : i64} {
  func.func @batch_vae_kernel(%arg0: i32, %arg1: memref<64x256xf32, #tpu.memory_space<vmem>>, %arg2: memref<64x64xf32, #tpu.memory_space<vmem>>, %arg3: memref<64x16xf32, #tpu.memory_space<vmem>>, %arg4: memref<256x128xbf16, #tpu.memory_space<vmem>>, %arg5: memref<1x128xf32, #tpu.memory_space<vmem>>, %arg6: memref<128x64xbf16, #tpu.memory_space<vmem>>, %arg7: memref<1x64xf32, #tpu.memory_space<vmem>>, %arg8: memref<64x32xbf16, #tpu.memory_space<vmem>>, %arg9: memref<1x32xf32, #tpu.memory_space<vmem>>, %arg10: memref<16x64xbf16, #tpu.memory_space<vmem>>, %arg11: memref<64x128xbf16, #tpu.memory_space<vmem>>, %arg12: memref<1x128xf32, #tpu.memory_space<vmem>>, %arg13: memref<128x256xbf16, #tpu.memory_space<vmem>>, %arg14: memref<1x256xf32, #tpu.memory_space<vmem>>, %arg15: memref<64x256xbf16, #tpu.memory_space<vmem>>, %arg16: memref<64x384xf32, #tpu.memory_space<vmem>>) attributes {dimension_semantics = [#tpu.dimension_semantics<parallel>], iteration_bounds = array<i64: 4>, scalar_prefetch = 0 : i64, scratch_operands = 0 : i64, tpu.core_type = #tpu.core_type<tc>, window_params = [{transform_indices = @transform_0, window_bounds = array<i64: 64, 256>}, {transform_indices = @transform_1, window_bounds = array<i64: 64, 64>}, {transform_indices = @transform_2, window_bounds = array<i64: 64, 16>}, {pipeline_mode = #tpu.pipeline_mode<synchronous>, transform_indices = @transform_3, window_bounds = array<i64: 256, 128>}, {pipeline_mode = #tpu.pipeline_mode<synchronous>, transform_indices = @transform_4, window_bounds = array<i64: 1, 128>}, {pipeline_mode = #tpu.pipeline_mode<synchronous>, transform_indices = @transform_5, window_bounds = array<i64: 128, 64>}, {pipeline_mode = #tpu.pipeline_mode<synchronous>, transform_indices = @transform_6, window_bounds = array<i64: 1, 64>}, {pipeline_mode = #tpu.pipeline_mode<synchronous>, transform_indices = @transform_7, window_bounds = array<i64: 64, 32>}, {pipeline_mode = #tpu.pipeline_mode<synchronous>, transform_indices = @transform_8, window_bounds = array<i64: 1, 32>}, {pipeline_mode = #tpu.pipeline_mode<synchronous>, transform_indices = @transform_9, window_bounds = array<i64: 16, 64>}, {pipeline_mode = #tpu.pipeline_mode<synchronous>, transform_indices = @transform_10, window_bounds = array<i64: 64, 128>}, {pipeline_mode = #tpu.pipeline_mode<synchronous>, transform_indices = @transform_11, window_bounds = array<i64: 1, 128>}, {pipeline_mode = #tpu.pipeline_mode<synchronous>, transform_indices = @transform_12, window_bounds = array<i64: 128, 256>}, {pipeline_mode = #tpu.pipeline_mode<synchronous>, transform_indices = @transform_13, window_bounds = array<i64: 1, 256>}, {transform_indices = @transform_14, window_bounds = array<i64: 64, 256>}, {transform_indices = @transform_15, window_bounds = array<i64: 64, 384>}]} {
    %c0 = arith.constant 0 : index
    %c0_0 = arith.constant 0 : index
    %0 = vector.load %arg1[%c0, %c0_0] : memref<64x256xf32, #tpu.memory_space<vmem>>, vector<64x256xf32>
    %1 = arith.truncf %0 : vector<64x256xf32> to vector<64x256xbf16>
    %c0_1 = arith.constant 0 : index
    %c0_2 = arith.constant 0 : index
    %2 = vector.load %arg4[%c0_1, %c0_2] : memref<256x128xbf16, #tpu.memory_space<vmem>>, vector<256x128xbf16>
    %cst = arith.constant dense<0.000000e+00> : vector<64x128xf32>
    %3 = tpu.matmul %1, %2, %cst {dimension_numbers = #tpu.dot_dimension_numbers<[1], [0], [0], [1], [0, 0, 1, 1], [], []>} : vector<64x256xbf16>, vector<256x128xbf16>, vector<64x128xf32> -> vector<64x128xf32>
    %c0_3 = arith.constant 0 : index
    %c0_4 = arith.constant 0 : index
    %4 = vector.load %arg5[%c0_3, %c0_4] : memref<1x128xf32, #tpu.memory_space<vmem>>, vector<1x128xf32>
    %5 = vector.broadcast %4 : vector<1x128xf32> to vector<64x128xf32>
    %6 = arith.addf %3, %5 : vector<64x128xf32>
    %cst_5 = arith.constant 0.000000e+00 : f32
    %7 = vector.broadcast %cst_5 : f32 to vector<64x128xf32>
    %8 = arith.cmpf ogt, %6, %7 : vector<64x128xf32>
    %cst_6 = arith.constant 0.000000e+00 : f32
    %9 = vector.broadcast %cst_6 : f32 to vector<64x128xf32>
    %10 = arith.minimumf %6, %9 : vector<64x128xf32>
    %11 = math.exp %10 : vector<64x128xf32>
    %cst_7 = arith.constant 1.000000e+00 : f32
    %12 = vector.broadcast %cst_7 : f32 to vector<64x128xf32>
    %13 = arith.subf %11, %12 : vector<64x128xf32>
    %cst_8 = arith.constant 1.67326319 : f32
    %14 = vector.broadcast %cst_8 : f32 to vector<64x128xf32>
    %15 = arith.mulf %14, %13 : vector<64x128xf32>
    %16 = arith.select %8, %6, %15 : vector<64x128xi1>, vector<64x128xf32>
    %cst_9 = arith.constant 1.05070102 : f32
    %17 = vector.broadcast %cst_9 : f32 to vector<64x128xf32>
    %18 = arith.mulf %17, %16 : vector<64x128xf32>
    %19 = arith.truncf %18 : vector<64x128xf32> to vector<64x128xbf16>
    %c0_10 = arith.constant 0 : index
    %c0_11 = arith.constant 0 : index
    %20 = vector.load %arg6[%c0_10, %c0_11] : memref<128x64xbf16, #tpu.memory_space<vmem>>, vector<128x64xbf16>
    %cst_12 = arith.constant dense<0.000000e+00> : vector<64x64xf32>
    %21 = tpu.matmul %19, %20, %cst_12 {dimension_numbers = #tpu.dot_dimension_numbers<[1], [0], [0], [1], [0, 0, 1, 1], [], []>} : vector<64x128xbf16>, vector<128x64xbf16>, vector<64x64xf32> -> vector<64x64xf32>
    %c0_13 = arith.constant 0 : index
    %c0_14 = arith.constant 0 : index
    %22 = vector.load %arg7[%c0_13, %c0_14] : memref<1x64xf32, #tpu.memory_space<vmem>>, vector<1x64xf32>
    %23 = vector.broadcast %22 : vector<1x64xf32> to vector<64x64xf32>
    %24 = arith.addf %21, %23 : vector<64x64xf32>
    %cst_15 = arith.constant 0.000000e+00 : f32
    %25 = vector.broadcast %cst_15 : f32 to vector<64x64xf32>
    %26 = arith.cmpf ogt, %24, %25 : vector<64x64xf32>
    %cst_16 = arith.constant 0.000000e+00 : f32
    %27 = vector.broadcast %cst_16 : f32 to vector<64x64xf32>
    %28 = arith.minimumf %24, %27 : vector<64x64xf32>
    %29 = math.exp %28 : vector<64x64xf32>
    %cst_17 = arith.constant 1.000000e+00 : f32
    %30 = vector.broadcast %cst_17 : f32 to vector<64x64xf32>
    %31 = arith.subf %29, %30 : vector<64x64xf32>
    %cst_18 = arith.constant 1.67326319 : f32
    %32 = vector.broadcast %cst_18 : f32 to vector<64x64xf32>
    %33 = arith.mulf %32, %31 : vector<64x64xf32>
    %34 = arith.select %26, %24, %33 : vector<64x64xi1>, vector<64x64xf32>
    %cst_19 = arith.constant 1.05070102 : f32
    %35 = vector.broadcast %cst_19 : f32 to vector<64x64xf32>
    %36 = arith.mulf %35, %34 : vector<64x64xf32>
    %37 = arith.truncf %36 : vector<64x64xf32> to vector<64x64xbf16>
    %c0_20 = arith.constant 0 : index
    %c0_21 = arith.constant 0 : index
    %38 = vector.load %arg8[%c0_20, %c0_21] : memref<64x32xbf16, #tpu.memory_space<vmem>>, vector<64x32xbf16>
    %cst_22 = arith.constant dense<0.000000e+00> : vector<64x32xf32>
    %39 = tpu.matmul %37, %38, %cst_22 {dimension_numbers = #tpu.dot_dimension_numbers<[1], [0], [0], [1], [0, 0, 1, 1], [], []>} : vector<64x64xbf16>, vector<64x32xbf16>, vector<64x32xf32> -> vector<64x32xf32>
    %c0_23 = arith.constant 0 : index
    %c0_24 = arith.constant 0 : index
    %40 = vector.load %arg9[%c0_23, %c0_24] : memref<1x32xf32, #tpu.memory_space<vmem>>, vector<1x32xf32>
    %41 = vector.broadcast %40 : vector<1x32xf32> to vector<64x32xf32>
    %42 = arith.addf %39, %41 : vector<64x32xf32>
    %43 = vector.extract_strided_slice %42 {offsets = [0, 0], sizes = [64, 16], strides = [1, 1]} : vector<64x32xf32> to vector<64x16xf32>
    %44 = vector.extract_strided_slice %42 {offsets = [0, 16], sizes = [64, 16], strides = [1, 1]} : vector<64x32xf32> to vector<64x16xf32>
    %cst_25 = arith.constant 5.000000e-01 : f32
    %45 = vector.broadcast %cst_25 : f32 to vector<64x16xf32>
    %46 = arith.mulf %45, %44 : vector<64x16xf32>
    %47 = math.exp %46 : vector<64x16xf32>
    %cst_26 = arith.constant 9.99999974E-5 : f32
    %48 = vector.broadcast %cst_26 : f32 to vector<64x16xf32>
    %49 = arith.addf %47, %48 : vector<64x16xf32>
    %c0_27 = arith.constant 0 : index
    %c0_28 = arith.constant 0 : index
    %50 = vector.load %arg3[%c0_27, %c0_28] : memref<64x16xf32, #tpu.memory_space<vmem>>, vector<64x16xf32>
    %51 = arith.mulf %49, %50 : vector<64x16xf32>
    %52 = arith.addf %43, %51 : vector<64x16xf32>
    %53 = arith.truncf %52 : vector<64x16xf32> to vector<64x16xbf16>
    %c0_29 = arith.constant 0 : index
    %c0_30 = arith.constant 0 : index
    %54 = vector.load %arg10[%c0_29, %c0_30] : memref<16x64xbf16, #tpu.memory_space<vmem>>, vector<16x64xbf16>
    %cst_31 = arith.constant dense<0.000000e+00> : vector<64x64xf32>
    %55 = tpu.matmul %53, %54, %cst_31 {dimension_numbers = #tpu.dot_dimension_numbers<[1], [0], [0], [1], [0, 0, 1, 1], [], []>} : vector<64x16xbf16>, vector<16x64xbf16>, vector<64x64xf32> -> vector<64x64xf32>
    %c0_32 = arith.constant 0 : index
    %c0_33 = arith.constant 0 : index
    %56 = vector.load %arg2[%c0_32, %c0_33] : memref<64x64xf32, #tpu.memory_space<vmem>>, vector<64x64xf32>
    %57 = arith.addf %55, %56 : vector<64x64xf32>
    %cst_34 = arith.constant 0.000000e+00 : f32
    %58 = vector.broadcast %cst_34 : f32 to vector<64x64xf32>
    %59 = arith.cmpf ogt, %57, %58 : vector<64x64xf32>
    %cst_35 = arith.constant 0.000000e+00 : f32
    %60 = vector.broadcast %cst_35 : f32 to vector<64x64xf32>
    %61 = arith.minimumf %57, %60 : vector<64x64xf32>
    %62 = math.exp %61 : vector<64x64xf32>
    %cst_36 = arith.constant 1.000000e+00 : f32
    %63 = vector.broadcast %cst_36 : f32 to vector<64x64xf32>
    %64 = arith.subf %62, %63 : vector<64x64xf32>
    %cst_37 = arith.constant 1.67326319 : f32
    %65 = vector.broadcast %cst_37 : f32 to vector<64x64xf32>
    %66 = arith.mulf %65, %64 : vector<64x64xf32>
    %67 = arith.select %59, %57, %66 : vector<64x64xi1>, vector<64x64xf32>
    %cst_38 = arith.constant 1.05070102 : f32
    %68 = vector.broadcast %cst_38 : f32 to vector<64x64xf32>
    %69 = arith.mulf %68, %67 : vector<64x64xf32>
    %70 = arith.truncf %69 : vector<64x64xf32> to vector<64x64xbf16>
    %c0_39 = arith.constant 0 : index
    %c0_40 = arith.constant 0 : index
    %71 = vector.load %arg11[%c0_39, %c0_40] : memref<64x128xbf16, #tpu.memory_space<vmem>>, vector<64x128xbf16>
    %cst_41 = arith.constant dense<0.000000e+00> : vector<64x128xf32>
    %72 = tpu.matmul %70, %71, %cst_41 {dimension_numbers = #tpu.dot_dimension_numbers<[1], [0], [0], [1], [0, 0, 1, 1], [], []>} : vector<64x64xbf16>, vector<64x128xbf16>, vector<64x128xf32> -> vector<64x128xf32>
    %c0_42 = arith.constant 0 : index
    %c0_43 = arith.constant 0 : index
    %73 = vector.load %arg12[%c0_42, %c0_43] : memref<1x128xf32, #tpu.memory_space<vmem>>, vector<1x128xf32>
    %74 = vector.broadcast %73 : vector<1x128xf32> to vector<64x128xf32>
    %75 = arith.addf %72, %74 : vector<64x128xf32>
    %cst_44 = arith.constant 0.000000e+00 : f32
    %76 = vector.broadcast %cst_44 : f32 to vector<64x128xf32>
    %77 = arith.cmpf ogt, %75, %76 : vector<64x128xf32>
    %cst_45 = arith.constant 0.000000e+00 : f32
    %78 = vector.broadcast %cst_45 : f32 to vector<64x128xf32>
    %79 = arith.minimumf %75, %78 : vector<64x128xf32>
    %80 = math.exp %79 : vector<64x128xf32>
    %cst_46 = arith.constant 1.000000e+00 : f32
    %81 = vector.broadcast %cst_46 : f32 to vector<64x128xf32>
    %82 = arith.subf %80, %81 : vector<64x128xf32>
    %cst_47 = arith.constant 1.67326319 : f32
    %83 = vector.broadcast %cst_47 : f32 to vector<64x128xf32>
    %84 = arith.mulf %83, %82 : vector<64x128xf32>
    %85 = arith.select %77, %75, %84 : vector<64x128xi1>, vector<64x128xf32>
    %cst_48 = arith.constant 1.05070102 : f32
    %86 = vector.broadcast %cst_48 : f32 to vector<64x128xf32>
    %87 = arith.mulf %86, %85 : vector<64x128xf32>
    %88 = arith.truncf %87 : vector<64x128xf32> to vector<64x128xbf16>
    %c0_49 = arith.constant 0 : index
    %c0_50 = arith.constant 0 : index
    %89 = vector.load %arg13[%c0_49, %c0_50] : memref<128x256xbf16, #tpu.memory_space<vmem>>, vector<128x256xbf16>
    %cst_51 = arith.constant dense<0.000000e+00> : vector<64x256xf32>
    %90 = tpu.matmul %88, %89, %cst_51 {dimension_numbers = #tpu.dot_dimension_numbers<[1], [0], [0], [1], [0, 0, 1, 1], [], []>} : vector<64x128xbf16>, vector<128x256xbf16>, vector<64x256xf32> -> vector<64x256xf32>
    %c0_52 = arith.constant 0 : index
    %c0_53 = arith.constant 0 : index
    %91 = vector.load %arg14[%c0_52, %c0_53] : memref<1x256xf32, #tpu.memory_space<vmem>>, vector<1x256xf32>
    %92 = vector.broadcast %91 : vector<1x256xf32> to vector<64x256xf32>
    %93 = arith.addf %90, %92 : vector<64x256xf32>
    %cst_54 = arith.constant 0.000000e+00 : f32
    %94 = vector.broadcast %cst_54 : f32 to vector<64x256xf32>
    %95 = arith.maximumf %93, %94 : vector<64x256xf32>
    %96 = arith.truncf %95 : vector<64x256xf32> to vector<64x256xbf16>
    %c0_55 = arith.constant 0 : index
    %c0_56 = arith.constant 0 : index
    %97 = vector.load %arg15[%c0_55, %c0_56] : memref<64x256xbf16, #tpu.memory_space<vmem>>, vector<64x256xbf16>
    tpu.vector_store %arg15[%c0_55, %c0_56], %96 {strides = array<i32>} : memref<64x256xbf16, #tpu.memory_space<vmem>>, vector<64x256xbf16>,
    %cst_57 = arith.constant 0.000000e+00 : f32
    %98 = vector.broadcast %cst_57 : f32 to vector<64x112xf32>
    %99 = tpu.concatenate %52, %98, %43, %98, %49, %98 in 1 : vector<64x16xf32>, vector<64x112xf32>, vector<64x16xf32>, vector<64x112xf32>, vector<64x16xf32>, vector<64x112xf32> -> vector<64x384xf32>
    %c0_58 = arith.constant 0 : index
    %c0_59 = arith.constant 0 : index
    %100 = vector.load %arg16[%c0_58, %c0_59] : memref<64x384xf32, #tpu.memory_space<vmem>>, vector<64x384xf32>
    tpu.vector_store %arg16[%c0_58, %c0_59], %99 {strides = array<i32>} : memref<64x384xf32, #tpu.memory_space<vmem>>, vector<64x384xf32>,
    return
  }
  func.func @transform_0(%arg0: i32) -> (i32, i32) {
    %c0_i32 = arith.constant 0 : i32
    %c0_i32_0 = arith.constant 0 : i32
    return %arg0, %c0_i32 : i32, i32
  }
  func.func @transform_1(%arg0: i32) -> (i32, i32) {
    %c0_i32 = arith.constant 0 : i32
    %c0_i32_0 = arith.constant 0 : i32
    return %arg0, %c0_i32 : i32, i32
  }
  func.func @transform_2(%arg0: i32) -> (i32, i32) {
    %c0_i32 = arith.constant 0 : i32
    %c0_i32_0 = arith.constant 0 : i32
    return %arg0, %c0_i32 : i32, i32
  }
  func.func @transform_3(%arg0: i32) -> (i32, i32) {
    %c0_i32 = arith.constant 0 : i32
    %c0_i32_0 = arith.constant 0 : i32
    %c0_i32_1 = arith.constant 0 : i32
    return %c0_i32, %c0_i32_0 : i32, i32
  }
  func.func @transform_4(%arg0: i32) -> (i32, i32) {
    %c0_i32 = arith.constant 0 : i32
    %c0_i32_0 = arith.constant 0 : i32
    %c0_i32_1 = arith.constant 0 : i32
    return %c0_i32, %c0_i32_0 : i32, i32
  }
  func.func @transform_5(%arg0: i32) -> (i32, i32) {
    %c0_i32 = arith.constant 0 : i32
    %c0_i32_0 = arith.constant 0 : i32
    %c0_i32_1 = arith.constant 0 : i32
    return %c0_i32, %c0_i32_0 : i32, i32
  }
  func.func @transform_6(%arg0: i32) -> (i32, i32) {
    %c0_i32 = arith.constant 0 : i32
    %c0_i32_0 = arith.constant 0 : i32
    %c0_i32_1 = arith.constant 0 : i32
    return %c0_i32, %c0_i32_0 : i32, i32
  }
  func.func @transform_7(%arg0: i32) -> (i32, i32) {
    %c0_i32 = arith.constant 0 : i32
    %c0_i32_0 = arith.constant 0 : i32
    %c0_i32_1 = arith.constant 0 : i32
    return %c0_i32, %c0_i32_0 : i32, i32
  }
  func.func @transform_8(%arg0: i32) -> (i32, i32) {
    %c0_i32 = arith.constant 0 : i32
    %c0_i32_0 = arith.constant 0 : i32
    %c0_i32_1 = arith.constant 0 : i32
    return %c0_i32, %c0_i32_0 : i32, i32
  }
  func.func @transform_9(%arg0: i32) -> (i32, i32) {
    %c0_i32 = arith.constant 0 : i32
    %c0_i32_0 = arith.constant 0 : i32
    %c0_i32_1 = arith.constant 0 : i32
    return %c0_i32, %c0_i32_0 : i32, i32
  }
  func.func @transform_10(%arg0: i32) -> (i32, i32) {
    %c0_i32 = arith.constant 0 : i32
    %c0_i32_0 = arith.constant 0 : i32
    %c0_i32_1 = arith.constant 0 : i32
    return %c0_i32, %c0_i32_0 : i32, i32
  }
  func.func @transform_11(%arg0: i32) -> (i32, i32) {
    %c0_i32 = arith.constant 0 : i32
    %c0_i32_0 = arith.constant 0 : i32
    %c0_i32_1 = arith.constant 0 : i32
    return %c0_i32, %c0_i32_0 : i32, i32
  }
  func.func @transform_12(%arg0: i32) -> (i32, i32) {
    %c0_i32 = arith.constant 0 : i32
    %c0_i32_0 = arith.constant 0 : i32
    %c0_i32_1 = arith.constant 0 : i32
    return %c0_i32, %c0_i32_0 : i32, i32
  }
  func.func @transform_13(%arg0: i32) -> (i32, i32) {
    %c0_i32 = arith.constant 0 : i32
    %c0_i32_0 = arith.constant 0 : i32
    %c0_i32_1 = arith.constant 0 : i32
    return %c0_i32, %c0_i32_0 : i32, i32
  }
  func.func @transform_14(%arg0: i32) -> (i32, i32) {
    %c0_i32 = arith.constant 0 : i32
    %c0_i32_0 = arith.constant 0 : i32
    return %arg0, %c0_i32 : i32, i32
  }
  func.func @transform_15(%arg0: i32) -> (i32, i32) {
    %c0_i32 = arith.constant 0 : i32
    %c0_i32_0 = arith.constant 0 : i32
    return %arg0, %c0_i32 : i32, i32
  }
}

</mosaic_0001>

<bundles_post_ra>
// kernel: batch_vae_forward.1
= control target key start
LH: loop header
LB: loop body
LE: loop exit
PB: predicated region body
PF: predicated region fallthrough
CT: control target
= control target key end

     0   :  { %s3694_s0 = inlined_call_operand.vmem [shape: f32[200,256], index: 0, kind: input, shape index: {}]   ;;  %s3695_s1 = inlined_call_operand.vmem [shape: f32[200,64], index: 1, kind: input, shape index: {}]   ;;  %s3696_s2 = inlined_call_operand.vmem [shape: f32[200,16], index: 2, kind: input, shape index: {}]   ;;  %s3697_s3 = inlined_call_operand.vmem [shape: bf16[256,128], index: 3, kind: input, shape index: {}]   ;;  %s3698_s4 = inlined_call_operand.vmem [shape: f32[1,128], index: 4, kind: input, shape index: {}]   ;;  %s3699_s5 = inlined_call_operand.vmem [shape: bf16[128,64], index: 5, kind: input, shape index: {}]   ;;  %s3700_s6 = inlined_call_operand.vmem [shape: f32[1,64], index: 6, kind: input, shape index: {}]   ;;  %s3701_s7 = inlined_call_operand.vmem [shape: bf16[64,32], index: 7, kind: input, shape index: {}]   ;;  %s3702_s8 = inlined_call_operand.vmem [shape: f32[1,32], index: 8, kind: input, shape index: {}]   ;;  %s3703_s9 = inlined_call_operand.vmem [shape: bf16[16,64], index: 9, kind: input, shape index: {}]   ;;  %s3704_s10 = inlined_call_operand.vmem [shape: bf16[64,128], index: 10, kind: input, shape index: {}]   ;;  %s3705_s11 = inlined_call_operand.vmem [shape: f32[1,128], index: 11, kind: input, shape index: {}]   ;;  %s3706_s12 = inlined_call_operand.vmem [shape: bf16[128,256], index: 12, kind: input, shape index: {}]   ;;  %s3707_s13 = inlined_call_operand.vmem [shape: f32[1,256], index: 13, kind: input, shape index: {}]   ;;  %s3708_s14 = inlined_call_operand.hbm [shape: bf16[200,256], index: 14, kind: output, shape index: {0}]   ;;  %s3709_s15 = inlined_call_operand.vmem [shape: f32[200,384], index: 15, kind: output, shape index: {1}]  }
   0x1   :  { %3717 = sst [smem:[#allocation12_spill]] %s3694_s0 }
   0x2   :  { %3718 = sst [smem:[#allocation13_spill]] %s3695_s1 }
   0x3   :  { %3719 = sst [smem:[#allocation14_spill]] %s3696_s2 }
   0x4   :  { %3720 = sst [smem:[#allocation15_spill]] %s3709_s15 }
   0x5   :  { %21 = vsyncpa [#allocation3], 0 }
   0x6   :  { %23 = vsyncpa [#allocation3 + $0x1], 0  ;;  %s3083_s18 = smov 0   ;;  %s3085_s19 = smov 0  }
   0x7   :  { %s3087_s20 = smov 0   ;;  %s3089_s21 = smov 0  }
   0x8 LB: > { %3721 = sst [smem:[#allocation6_spill]] %s2951_s18  ;;  %s3104_s22 = sadd.s32 4294967295, %s2963_s21   ;;  %s2963_s21 = sphi %s3089_s21, %s3742_s21   ;;  %s2959_s20 = sphi %s3087_s20, %s3744_s20   ;;  %s2955_s19 = sphi %s3085_s19, %s3746_s19   ;;  %s2951_s18 = sphi %s3083_s18, %s3745_s18  }
   0x9   : > { %3722 = sst [smem:[#allocation7_spill]] %s2959_s20  ;;  %s2334_s23 = sadd.s32 4294967294, %s2963_s21  }
   0xa   : > { %3723 = sst [smem:[#allocation8_spill]] %s2963_s21  ;;  %s3108_s24 = sadd.s32 1, %s2963_s21  }
   0xb   : > { %3724 = sst [smem:[#allocation9_spill]] %s3108_s24  ;;  %s345_s25 = sadd.s32 1, %s2959_s20 }
   0xc   : > { %s342_s26 = ssub.s32 %s2963_s21, %s3108_s24  ;;  %p355_p0 = scmp.ne.s32.totalorder %s2959_s20, %s2955_s19 }
   0xd   : > { %p343_p1 = scmp.eq.s32.totalorder %s342_s26, 0  ;;  %p356_p2 = scmp.eq.s32.totalorder %s3104_s22, 3 }
   0xe   : > { %p361_p3 = scmp.ne.s32.totalorder %s2955_s19, %s2951_s18  ;;  %p362_p4 = scmp.eq.s32.totalorder %s2334_s23, 3 }
   0xf   : > { %s3119_s27 = scalar_select %p343_p1, %s2959_s20, %s345_s25  }
  0x10   : > { %p3121_p5 = por %p356_p2, %p355_p0  ;;  %p3125_p6 = por %p362_p4, %p361_p3 }
  0x11   : > { %3725 = sst [smem:[#allocation10_spill]] %s3119_s27  ;;  %p2337_p7 = scmp.ge.s32.totalorder %s2963_s21, 1 }
  0x12   : > { %s3727_s29 = scalar_select %p3125_p6, 1, 0 }
  0x13   : > { %p493_p8 = scmp.lt.s32.totalorder %s2963_s21, 5 }
  0x14   : > { %3728 = sst [smem:[#allocation11_spill]] %s3727_s29 }
  0x15   : > { %p494_p9 = pnand %p2337_p7, %p493_p8 }
  0x16   : > { %s3135_s17 = sshll.u32 (!%p494_p9), %s3104_s22, 3  ;;  %s3729_s0 = sld [smem:[#allocation12_spill]] (!%p494_p9) }
  0x17   : > { %497 = sbr.rel (%p494_p9) target bundleno = 1639 (0x667), region = 76  ;;  %p575_p10 = scmp.lt.s32.totalorder (!%p494_p9), %s3135_s17, 24 }
  0x18   : > { %s3730_s2 = sld [smem:[#allocation14_spill]] (!%p494_p9)  ;;  %s2997_s27 = smov (!%p494_p9), 16  }
  0x19   : > { %s3266_s15 = sand.u32 (!%p494_p9), 1, %s2955_s19   ;;  %s3731_s1 = sld [smem:[#allocation13_spill]] (!%p494_p9) }
  0x1a   : > { %s2625_s24 = smul.u32 (!%p494_p9), 192, %s3266_s15  ;;  %s3716_s26 = scalar_lea.sflag (!%p494_p9), [#allocation3], %s3266_s15 }
  0x1c   : > { %v2734_v0 = vld [vmem:[%s3697_s3 + $0x78] sm:$0xff]   ;;  %v2736_v2 = vld [vmem:[%s3697_s3 + $0x70] sm:$0xff]   ;;  %v2738_v4 = vld [vmem:[%s3697_s3 + $0x68] sm:$0xff]   ;;  %s3151_s23 = scalar_select %p575_p10, %s3135_s17, 24  ;;  %vm1162_vm12 = vcmask 523264  }
  0x1d   : > { %v2735_v1 = vld [vmem:[%s3697_s3 + $0x38] sm:$0xff]   ;;  %2486 = vmatprep.subr.bf16.mxu0 %v2734_v0  ;;  %v2737_v3 = vld [vmem:[%s3697_s3 + $0x30] sm:$0xff]   ;;  %v2739_v5 = vld [vmem:[%s3697_s3 + $0x28] sm:$0xff]  }
  0x1e   : > { %2487 = vmatpush3.bf16.msra.mxu0 %v2735_v1  ;;  %v2740_v6 = vld [vmem:[%s3697_s3 + $0x60] sm:$0xff]   ;;  %s2474_s20 = sshll.u32 %s3151_s23, 4  ;;  %v2742_v8 = vld [vmem:[%s3697_s3 + $0x58] sm:$0xff]   ;;  %v2744_v10 = vld [vmem:[%s3697_s3 + $0x50] sm:$0xff]   ;;  %s2343_s30 = sshll.u32 %s3151_s23, 3 }
  0x1f   : > { %2488 = vmatprep.subr.bf16.mxu0 %v2736_v2  ;;  %v2741_v7 = vld [vmem:[%s3697_s3 + $0x20] sm:$0xff]   ;;  %s3169_s29 = scalar_lea.vmem %s3729_s0, %s2474_s20  ;;  %v2743_v9 = vld [vmem:[%s3697_s3 + $0x18] sm:$0xff]   ;;  %v2745_v14 = vld [vmem:[%s3697_s3 + $0x10] sm:$0xff]   ;;  %s608_s25 = scalar_lea.vmem %s3730_s2, %s2343_s30 }
  0x20   : > { %v628_v11 = vld [vmem:[%s3169_s29 + $0x8] sm:$0xff]  ;;  %v630_v12 = vld [vmem:[%s3169_s29 + $0x18] sm:$0xff]  ;;  %v2748_v17 = vld [vmem:[%s3697_s3 + $0x40] sm:$0xff]   ;;  %s3402_s21 = scalar_lea.vmem %s3731_s1, %s2343_s30 }
  0x21   : > { %v644_v13 = vpack.c.bf16 %v630_v12, %v628_v11  ;;  %v2746_v15 = vld [vmem:[%s3697_s3 + $0x48] sm:$0xff]   ;;  %v2749_v18 = vld [vmem:[%s3697_s3] sm:$0xff]   ;;  %v629_v20 = vld [vmem:[%s3169_s29 + $0x10] sm:$0xff] }
  0x22   : > { %2489 = vmatpush3.bf16.msra.mxu0 %v2737_v3  ;;  %v2747_v16 = vld [vmem:[%s3697_s3 + $0x8] sm:$0xff]   ;;  %v627_v19 = vld [vmem:[%s3169_s29] sm:$0xff]  ;;  %v634_v22 = vld [vmem:[%s3169_s29 + $0x38] sm:$0xff] }
  0x23   : > { %2490 = vmatprep.subr.bf16.mxu0 %v2738_v4  ;;  %818 = vmatprep.mubr.bf16.mxu0 %v644_v13  ;;  %v632_v21 = vld [vmem:[%s3169_s29 + $0x28] sm:$0xff]  ;;  %v643_v23 = vpack.c.bf16 %v629_v20, %v627_v19  ;;  %v631_v25 = vld [vmem:[%s3169_s29 + $0x20] sm:$0xff]  ;;  %v633_v26 = vld [vmem:[%s3169_s29 + $0x30] sm:$0xff] }
  0x24   : > { %v646_v24 = vpack.c.bf16 %v634_v22, %v632_v21  ;;  %v636_v27 = vld [vmem:[%s3169_s29 + $0x48] sm:$0xff]  ;;  %v638_v28 = vld [vmem:[%s3169_s29 + $0x58] sm:$0xff]  ;;  %v645_v29 = vpack.c.bf16 %v633_v26, %v631_v25  ;;  %v635_v31 = vld [vmem:[%s3169_s29 + $0x40] sm:$0xff] }
  0x25   : > { %v648_v30 = vpack.c.bf16 %v638_v28, %v636_v27  ;;  %v637_v32 = vld [vmem:[%s3169_s29 + $0x50] sm:$0xff]  ;;  %v640_v33 = vld [vmem:[%s3169_s29 + $0x68] sm:$0xff]  ;;  %v642_v34 = vld [vmem:[%s3169_s29 + $0x78] sm:$0xff] }
  0x26   : > { %2491 = vmatpush3.bf16.msra.mxu0 %v2739_v5  ;;  %v647_v35 = vpack.c.bf16 %v637_v32, %v635_v31  ;;  %v650_v36 = vpack.c.bf16 %v642_v34, %v640_v33  ;;  %v639_v37 = vld [vmem:[%s3169_s29 + $0x60] sm:$0xff]  ;;  %v641_v38 = vld [vmem:[%s3169_s29 + $0x70] sm:$0xff]  ;;  %v2750_v40 = vld [vmem:[%s3699_s5 + $0x38] sm:$0xff]  }
  0x27   : > { %2492 = vmatprep.subr.bf16.mxu0 %v2740_v6  ;;  %v649_v39 = vpack.c.bf16 %v641_v38, %v639_v37  ;;  %2559 = vmatprep.subr.bf16.mxu1 %v2750_v40  ;;  %v2751_v41 = vld [vmem:[%s3699_s5 + $0x30] sm:$0xff]   ;;  %v2752_v42 = vld [vmem:[%s3699_s5 + $0x28] sm:$0xff]   ;;  %v2753_v43 = vld [vmem:[%s3699_s5 + $0x20] sm:$0xff]  }
  0x28   : > { %2560 = vmatpush3.bf16.msra.mxu1 %v2750_v40  ;;  %v2754_v44 = vld [vmem:[%s3699_s5 + $0x18] sm:$0xff]   ;;  %v2755_v45 = vld [vmem:[%s3699_s5 + $0x10] sm:$0xff]   ;;  %v2756_v46 = vld [vmem:[%s3699_s5 + $0x8] sm:$0xff]  }
  0x29   : > { %2561 = vmatprep.subr.bf16.mxu1 %v2751_v41  ;;  %v2757_v47 = vld [vmem:[%s3699_s5] sm:$0xff]  }
  0x2a   : > { %2493 = vmatpush3.bf16.msra.mxu0 %v2741_v7  ;;  %v2346_v49 = vld [vmem:[%s3698_s4] ss:$0 sm:$0xff] }
  0x2b   : > { %2494 = vmatprep.subr.bf16.mxu0 %v2742_v8 }
  0x2c   : > { %2562 = vmatpush3.bf16.msra.mxu1 %v2751_v41 }
  0x2d   : > { %2563 = vmatprep.subr.bf16.mxu1 %v2752_v42 }
  0x2e   : > { %2495 = vmatpush3.bf16.msra.mxu0 %v2743_v9 }
  0x2f   : > { %2496 = vmatprep.subr.bf16.mxu0 %v2744_v10 }
  0x30   : > { %2564 = vmatpush3.bf16.msra.mxu1 %v2752_v42 }
  0x31   : > { %2565 = vmatprep.subr.bf16.mxu1 %v2753_v43 }
  0x32   : > { %2497 = vmatpush3.bf16.msra.mxu0 %v2745_v14 }
  0x33   : > { %2498 = vmatprep.subr.bf16.mxu0 %v2746_v15 }
  0x34   : > { %2566 = vmatpush3.bf16.msra.mxu1 %v2753_v43 }
  0x35   : > { %2567 = vmatprep.subr.bf16.mxu1 %v2754_v44 }
  0x36   : > { %2499 = vmatpush3.bf16.msra.mxu0 %v2747_v16 }
  0x37   : > { %2500 = vmatprep.subr.bf16.mxu0 %v2748_v17 }
  0x38   : > { %2568 = vmatpush3.bf16.msra.mxu1 %v2754_v44 }
  0x39   : > { %2569 = vmatprep.subr.bf16.mxu1 %v2755_v45 }
  0x3a   : > { %2501 = vmatpush3.bf16.msra.mxu0 %v2749_v18 }
  0x3c   : > { %2570 = vmatpush3.bf16.msra.mxu1 %v2755_v45 }
  0x3d   : > { %819 = vmatmul.mubr.bf16.vlgmr.msra.gmra.mxu0 %v643_v23  ;;  %2571 = vmatprep.subr.bf16.mxu1 %v2756_v46 }
  0x3e   : > { %826 = vmatprep.mubr.bf16.mxu0 %v646_v24 }
  0x40   : > { %2572 = vmatpush3.bf16.msra.mxu1 %v2756_v46 }
  0x41   : > { %2573 = vmatprep.subr.bf16.mxu1 %v2757_v47 }
  0x44   : > { %2574 = vmatpush3.bf16.msra.mxu1 %v2757_v47 }
  0x45   : > { %827 = vmatmul.mubr.bf16.gmra.mxu0 %v645_v29 }
  0x46   : > { %834 = vmatprep.mubr.bf16.mxu0 %v648_v30 }
  0x4d   : > { %835 = vmatmul.mubr.bf16.gmra.mxu0 %v647_v35 }
  0x4e   : > { %842 = vmatprep.mubr.bf16.mxu0 %v650_v36 }
  0x55   : > { %843 = vmatmul.mubr.bf16.gmra.mxu0 %v649_v39 }
  0xfd   : > { %v2502_v48 = vpop.f32.mrf.mxu0 }
  0xff   : > { %v2503_v50 = vpop.f32.mrf.mxu0 }
 0x100   : > { %v2504_v51 = vadd.f32 %v2503_v50, %v2502_v48 }
 0x101   : > { %v2505_v52 = vpop.f32.mrf.mxu0 }
 0x102   : > { %v821_v53 = vadd.f32 %v2504_v51, %v2346_v49 }
 0x103   : > { %v2506_v54 = vpop.f32.mrf.mxu0 }
 0x104   : > { %v859_v55 = vmin.f32 %v821_v53, 0.0  ;;  %v2507_v56 = vadd.f32 %v2506_v54, %v2505_v52  ;;  %vm851_vm0 = vcmp.gt.f32.partialorder %v821_v53, 0.0 }
 0x105   : > { %v2508_v57 = vpop.f32.mrf.mxu0 }
 0x106   : > { %v867_v58 = vmul.f32 1.442695, %v859_v55  ;;  %v824_v59 = vadd.f32 %v2507_v56, %v2346_v49 }
 0x107   : > { %v2509_v60 = vpop.f32.mrf.mxu0 }
 0x108   : > { %2791 = vpow2.f32 %v867_v58  ;;  %v860_v61 = vmin.f32 %v824_v59, 0.0  ;;  %v2510_v62 = vadd.f32 %v2509_v60, %v2508_v57  ;;  %vm852_vm1 = vcmp.gt.f32.partialorder %v824_v59, 0.0 }
 0x109   : > { %v2511_v63 = vpop.f32.mrf.mxu0 }
 0x10a   : > { %v869_v0 = vmul.f32 1.442695, %v860_v61  ;;  %v829_v1 = vadd.f32 %v2510_v62, %v2346_v49 }
 0x10b   : > { %v2512_v2 = vpop.f32.mrf.mxu0 }
 0x10c   : > { %2793 = vpow2.f32 %v869_v0  ;;  %v861_v3 = vmin.f32 %v829_v1, 0.0  ;;  %v2513_v4 = vadd.f32 %v2512_v2, %v2511_v63  ;;  %vm853_vm2 = vcmp.gt.f32.partialorder %v829_v1, 0.0 }
 0x10d   : > { %v2514_v5 = vpop.f32.mrf.mxu0 }
 0x10e   : > { %v871_v6 = vmul.f32 1.442695, %v861_v3  ;;  %v832_v7 = vadd.f32 %v2513_v4, %v2346_v49 }
 0x10f   : > { %v2515_v8 = vpop.f32.mrf.mxu0 }
 0x110   : > { %2795 = vpow2.f32 %v871_v6  ;;  %v862_v9 = vmin.f32 %v832_v7, 0.0  ;;  %v2516_v10 = vadd.f32 %v2515_v8, %v2514_v5  ;;  %vm854_vm3 = vcmp.gt.f32.partialorder %v832_v7, 0.0 }
 0x111   : > { %v2517_v11 = vpop.f32.mrf.mxu0 }
 0x112   : > { %v873_v12 = vmul.f32 1.442695, %v862_v9  ;;  %v837_v13 = vadd.f32 %v2516_v10, %v2346_v49 }
 0x113   : > { %v2518_v14 = vpop.f32.mrf.mxu0 }
 0x114   : > { %2797 = vpow2.f32 %v873_v12  ;;  %v863_v15 = vmin.f32 %v837_v13, 0.0  ;;  %v2519_v16 = vadd.f32 %v2518_v14, %v2517_v11  ;;  %vm855_vm4 = vcmp.gt.f32.partialorder %v837_v13, 0.0  ;;  %v2759_v14 = vld [vmem:[%s3701_s7 + $0x10] sm:$0xff]  }
 0x115   : > { %v2792_v17 = vpop.eup %2791  ;;  %v2520_v18 = vpop.f32.mrf.mxu0 }
 0x116   : > { %v875_v19 = vmul.f32 1.442695, %v863_v15  ;;  %v840_v20 = vadd.f32 %v2519_v16, %v2346_v49  ;;  %v2363_v21 = vadd.f32 -1.0, %v2792_v17  ;;  %v2760_v15 = vld [vmem:[%s3701_s7 + $0x8] sm:$0xff]   ;;  %v2761_v16 = vld [vmem:[%s3701_s7] sm:$0xff]   ;;  %v1274_v17 = vld [vmem:[%s608_s25 + $0x10] sm:$0xff] }
 0x117   : > { %v2521_v22 = vpop.f32.mrf.mxu0  ;;  %1292 = vrot.lane.b32.xlu1 %v1274_v17, %s2997_s27 }
 0x118   : > { %2799 = vpow2.f32 %v875_v19  ;;  %v864_v23 = vmin.f32 %v840_v20, 0.0  ;;  %v2522_v24 = vadd.f32 %v2521_v22, %v2520_v18  ;;  %v891_v27 = vmul.f32 1.6732632, %v2363_v21  ;;  %v1272_v18 = vld [vmem:[%s608_s25] sm:$0xff]  ;;  %v1275_v19 = vld [vmem:[%s608_s25 + $0x18] sm:$0xff]  ;;  %v1277_v22 = vld [vmem:[%s608_s25 + $0x28] sm:$0xff] }
 0x119   : > { %v2794_v25 = vpop.eup %2793  ;;  %v2523_v26 = vpop.f32.mrf.mxu0  ;;  %vm856_vm5 = vcmp.gt.f32.partialorder %v840_v20, 0.0  ;;  %1288 = vrot.lane.b32.xlu0 %v1272_v18, %s2997_s27  ;;  %v1276_v21 = vld [vmem:[%s608_s25 + $0x20] sm:$0xff] }
 0x11a   : > { %v877_v28 = vmul.f32 1.442695, %v864_v23  ;;  %v845_v29 = vadd.f32 %v2522_v24, %v2346_v49  ;;  %v2364_v30 = vadd.f32 -1.0, %v2794_v25  ;;  %v899_v36 = vsel %vm851_vm0, %v821_v53, %v891_v27  ;;  %v1278_v23 = vld [vmem:[%s608_s25 + $0x30] sm:$0xff]  ;;  %v1279_v24 = vld [vmem:[%s608_s25 + $0x38] sm:$0xff] }
 0x11b   : > { %v2524_v31 = vpop.f32.mrf.mxu0  ;;  %v907_v42 = vmul.f32 1.050701, %v899_v36  ;;  %1294 = vrot.lane.b32.xlu1 %v1275_v19, %s2997_s27  ;;  %v2371_v25 = vld [vmem:[%s3700_s6] ss:$0 sm:$0xff] }
 0x11c   : > { %2801 = vpow2.f32 %v877_v28  ;;  %v865_v32 = vmin.f32 %v845_v29, 0.0  ;;  %v2525_v33 = vadd.f32 %v2524_v31, %v2523_v26  ;;  %v892_v35 = vmul.f32 1.6732632, %v2364_v30 }
 0x11d   : > { %v2796_v34 = vpop.eup %2795  ;;  %vm857_vm6 = vcmp.gt.f32.partialorder %v845_v29, 0.0 }
 0x11e   : > { %v879_v37 = vmul.f32 1.442695, %v865_v32  ;;  %v848_v38 = vadd.f32 %v2525_v33, %v2346_v49  ;;  %v2365_v39 = vadd.f32 -1.0, %v2796_v34  ;;  %v900_v40 = vsel %vm852_vm1, %v824_v59, %v892_v35 }
 0x11f   : > { %v908_v43 = vmul.f32 1.050701, %v900_v40  ;;  %1298 = vrot.lane.b32.xlu1 %v1277_v22, %s2997_s27  ;;  %vm1380_vm1 = vcmask 130048  }
 0x120   : > { %2803 = vpow2.f32 %v879_v37  ;;  %v866_v41 = vmin.f32 %v848_v38, 0.0  ;;  %v893_v45 = vmul.f32 1.6732632, %v2365_v39  ;;  %vm858_vm7 = vcmp.gt.f32.partialorder %v848_v38, 0.0 }
 0x121   : > { %v2798_v44 = vpop.eup %2797  ;;  %v915_v47 = vpack.c.bf16 %v908_v43, %v907_v42 }
 0x122   : > { %v881_v46 = vmul.f32 1.442695, %v866_v41  ;;  %v2366_v48 = vadd.f32 -1.0, %v2798_v44  ;;  %v901_v51 = vsel %vm853_vm2, %v829_v1, %v893_v45 }
 0x123   : > { %2575 = vmatprep.mubr.bf16.mxu1 %v915_v47  ;;  %v909_v54 = vmul.f32 1.050701, %v901_v51  ;;  %1302 = vrot.lane.b32.xlu1 %v1279_v24, %s2997_s27 }
 0x124   : > { %2805 = vpow2.f32 %v881_v46  ;;  %v894_v50 = vmul.f32 1.6732632, %v2366_v48 }
 0x125   : > { %v2800_v52 = vpop.eup %2799 }
 0x126   : > { %v902_v49 = vsel %vm854_vm3, %v832_v7, %v894_v50  ;;  %v2367_v53 = vadd.f32 -1.0, %v2800_v52 }
 0x127   : > { %v910_v55 = vmul.f32 1.050701, %v902_v49 }
 0x128   : > { %v895_v56 = vmul.f32 1.6732632, %v2367_v53 }
 0x129   : > { %v2802_v57 = vpop.eup %2801  ;;  %v916_v58 = vpack.c.bf16 %v910_v55, %v909_v54 }
 0x12a   : > { %v2368_v59 = vadd.f32 -1.0, %v2802_v57  ;;  %v903_v61 = vsel %vm855_vm4, %v837_v13, %v895_v56  ;;  %v2758_v13 = vld [vmem:[%s3701_s7 + $0x18] sm:$0xff]  }
 0x12b   : > { %2576 = vmatmul.mubr.bf16.vlgmr.msra.gmra.mxu1 %v916_v58  ;;  %v911_v2 = vmul.f32 1.050701, %v903_v61  ;;  %2583 = vmatprep.subr.bf16.mxu1 %v2758_v13 }
 0x12c   : > { %v896_v60 = vmul.f32 1.6732632, %v2368_v59  ;;  %2584 = vmatpush3.bf16.msra.mxu1 %v2758_v13 }
 0x12d   : > { %v2804_v62 = vpop.eup %2803  ;;  %2585 = vmatprep.subr.bf16.mxu1 %v2759_v14 }
 0x12e   : > { %v904_v63 = vsel %vm856_vm5, %v840_v20, %v896_v60  ;;  %v2369_v0 = vadd.f32 -1.0, %v2804_v62  ;;  %v1273_v20 = vld [vmem:[%s608_s25 + $0x8] sm:$0xff]  ;;  %s3282_s25 = scalar_lea.vmem [#allocation4], %s2625_s24  }
 0x12f   : > { %v912_v1 = vmul.f32 1.050701, %v904_v63  ;;  %1290 = vrot.lane.b32.xlu0 %v1273_v20, %s2997_s27 }
 0x130   : > { %v897_v3 = vmul.f32 1.6732632, %v2369_v0  ;;  %2586 = vmatpush3.bf16.msra.mxu1 %v2759_v14 }
 0x131   : > { %v2806_v4 = vpop.eup %2805  ;;  %v917_v5 = vpack.c.bf16 %v912_v1, %v911_v2  ;;  %2587 = vmatprep.subr.bf16.mxu1 %v2760_v15 }
 0x132   : > { %v2370_v6 = vadd.f32 -1.0, %v2806_v4  ;;  %v905_v8 = vsel %vm857_vm6, %v845_v29, %v897_v3 }
 0x133   : > { %2579 = vmatprep.mubr.bf16.mxu1 %v917_v5  ;;  %v913_v10 = vmul.f32 1.050701, %v905_v8  ;;  %1296 = vrot.lane.b32.xlu0 %v1276_v21, %s2997_s27 }
 0x134   : > { %v898_v7 = vmul.f32 1.6732632, %v2370_v6  ;;  %2588 = vmatpush3.bf16.msra.mxu1 %v2760_v15 }
 0x135   : > { %2589 = vmatprep.subr.bf16.mxu1 %v2761_v16 }
 0x136   : > { %v906_v9 = vsel %vm858_vm7, %v848_v38, %v898_v7 }
 0x137   : > { %v914_v11 = vmul.f32 1.050701, %v906_v9  ;;  %1300 = vrot.lane.b32.xlu0 %v1278_v23, %s2997_s27  ;;  %s2998_s27 = smov 112  }
 0x138   : > { %2590 = vmatpush3.bf16.msra.mxu1 %v2761_v16 }
 0x139   : > { %v918_v12 = vpack.c.bf16 %v914_v11, %v913_v10 }
 0x13b   : > { %2580 = vmatmul.mubr.bf16.gmra.mxu1 %v918_v12 }
 0x1eb   : > { %v2577_v26 = vpop.f32.mrf.mxu1 }
 0x1ec   : > { %v1033_v27 = vadd.f32 %v2577_v26, %v2371_v25 }
 0x1ed   : > { %v1024_v28 = vpop.f32.mrf.mxu1 }
 0x1ee   : > { %v1065_v29 = vmin.f32 %v1033_v27, 0.0  ;;  %v1025_v30 = vadd.f32 %v2371_v25, %v1024_v28  ;;  %vm1057_vm10 = vcmp.gt.f32.partialorder %v1033_v27, 0.0 }
 0x1ef   : > { %v2578_v31 = vpop.f32.mrf.mxu1 }
 0x1f0   : > { %v1075_v32 = vmul.f32 1.442695, %v1065_v29  ;;  %v1063_v33 = vmin.f32 %v1025_v30, 0.0  ;;  %v1036_v34 = vadd.f32 %v2578_v31, %v2371_v25  ;;  %vm1055_vm9 = vcmp.gt.f32.partialorder %v1025_v30, 0.0 }
 0x1f1   : > { %v1027_v35 = vpop.f32.mrf.mxu1 }
 0x1f2   : > { %2807 = vpow2.f32 %v1075_v32  ;;  %v1071_v36 = vmul.f32 1.442695, %v1063_v33  ;;  %v1066_v37 = vmin.f32 %v1036_v34, 0.0  ;;  %v1028_v38 = vadd.f32 %v2371_v25, %v1027_v35 }
 0x1f3   : > { %vm1058_vm8 = vcmp.gt.f32.partialorder %v1036_v34, 0.0 }
 0x1f4   : > { %2809 = vpow2.f32 %v1071_v36  ;;  %v1077_v39 = vmul.f32 1.442695, %v1066_v37  ;;  %v1064_v40 = vmin.f32 %v1028_v38, 0.0  ;;  %vm1056_vm11 = vcmp.gt.f32.partialorder %v1028_v38, 0.0 }
 0x1f6   : > { %2811 = vpow2.f32 %v1077_v39  ;;  %v1073_v41 = vmul.f32 1.442695, %v1064_v40  ;;  %v2388_v39 = vld [vmem:[%s3702_s8] ss:$0 sm:$0xff] }
 0x1f8   : > { %2813 = vpow2.f32 %v1073_v41 }
 0x1fb   : > { %v2581_v42 = vpop.f32.mrf.mxu1 }
 0x1fc   : > { %v3256_v43 = vadd.f32 %v2581_v42, %v2371_v25 }
 0x1fd   : > { %v1040_v44 = vpop.f32.mrf.mxu1 }
 0x1fe   : > { %v1069_v45 = vmin.f32 %v3256_v43, 0.0  ;;  %v1041_v46 = vadd.f32 %v2371_v25, %v1040_v44  ;;  %vm1061_vm15 = vcmp.gt.f32.partialorder %v3256_v43, 0.0 }
 0x1ff   : > { %v2808_v47 = vpop.eup %2807  ;;  %v2582_v48 = vpop.f32.mrf.mxu1 }
 0x200   : > { %v1083_v50 = vmul.f32 1.442695, %v1069_v45  ;;  %v1067_v51 = vmin.f32 %v1041_v46, 0.0  ;;  %v1052_v49 = vadd.f32 %v2582_v48, %v2371_v25  ;;  %v2382_v54 = vadd.f32 -1.0, %v2808_v47 }
 0x201   : > { %v2810_v52 = vpop.eup %2809  ;;  %v1043_v53 = vpop.f32.mrf.mxu1  ;;  %vm1059_vm13 = vcmp.gt.f32.partialorder %v1041_v46, 0.0 }
 0x202   : > { %v2380_v55 = vadd.f32 -1.0, %v2810_v52  ;;  %2815 = vpow2.f32 %v1083_v50  ;;  %v1079_v56 = vmul.f32 1.442695, %v1067_v51  ;;  %v1070_v58 = vmin.f32 %v1052_v49, 0.0 }
 0x203   : > { %v2812_v57 = vpop.eup %2811  ;;  %v1044_v59 = vadd.f32 %v2371_v25, %v1043_v53  ;;  %v1097_v2 = vmul.f32 1.6732632, %v2382_v54  ;;  %vm1062_vm14 = vcmp.gt.f32.partialorder %v1052_v49, 0.0 }
 0x204   : > { %v2383_v60 = vadd.f32 -1.0, %v2812_v57  ;;  %2817 = vpow2.f32 %v1079_v56  ;;  %v1095_v61 = vmul.f32 1.6732632, %v2380_v55  ;;  %v1085_v62 = vmul.f32 1.442695, %v1070_v58 }
 0x205   : > { %v1068_v63 = vmin.f32 %v1044_v59, 0.0  ;;  %v2814_v0 = vpop.eup %2813  ;;  %v1105_v8 = vsel %vm1057_vm10, %v1033_v27, %v1097_v2  ;;  %vm1060_vm0 = vcmp.gt.f32.partialorder %v1044_v59, 0.0 }
 0x206   : > { %v1098_v1 = vmul.f32 1.6732632, %v2383_v60  ;;  %v2381_v3 = vadd.f32 -1.0, %v2814_v0  ;;  %2819 = vpow2.f32 %v1085_v62  ;;  %v1103_v6 = vsel %vm1055_vm9, %v1025_v30, %v1095_v61 }
 0x207   : > { %v1081_v4 = vmul.f32 1.442695, %v1068_v63  ;;  %v1111_v11 = vmul.f32 1.050701, %v1103_v6  ;;  %v1113_v13 = vmul.f32 1.050701, %v1105_v8 }
 0x208   : > { %v1106_v5 = vsel %vm1058_vm8, %v1036_v34, %v1098_v1  ;;  %v1096_v7 = vmul.f32 1.6732632, %v2381_v3  ;;  %v1289_v3 = vpop.permute.xlu0 %1288 }
 0x209   : > { %2821 = vpow2.f32 %v1081_v4  ;;  %v1114_v9 = vmul.f32 1.050701, %v1106_v5 }
 0x20a   : > { %v1104_v10 = vsel %vm1056_vm11, %v1028_v38, %v1096_v7  ;;  %v2762_v38 = vld [vmem:[%s3703_s9] sm:$0xff]  }
 0x20b   : > { %v1112_v12 = vmul.f32 1.050701, %v1104_v10  ;;  %v1120_v16 = vpack.c.bf16 %v1114_v9, %v1113_v13  ;;  %2599 = vmatprep.subr.bf16.mxu1 %v2762_v38 }
 0x20d   : > { %v1119_v14 = vpack.c.bf16 %v1112_v12, %v1111_v11 }
 0x20f   : > { %v2816_v15 = vpop.eup %2815  ;;  %2591 = vmatprep.mubr.msk.bf16.mxu1 %vm1162_vm12, %v1119_v14 }
 0x210   : > { %2592 = vmatmul.mubr.msk.bf16.vlgmr.msra.gmra.mxu1 %vm1162_vm12, %v1120_v16  ;;  %v2386_v18 = vadd.f32 -1.0, %v2816_v15  ;;  %v1293_v15 = vpop.permute.xlu1 %1292 }
 0x211   : > { %v2818_v17 = vpop.eup %2817  ;;  %2600 = vmatpush3.bf16.msra.mxu1 %v2762_v38 }
 0x212   : > { %v2384_v19 = vadd.f32 -1.0, %v2818_v17  ;;  %v1101_v24 = vmul.f32 1.6732632, %v2386_v18 }
 0x213   : > { %v2820_v20 = vpop.eup %2819 }
 0x214   : > { %v1099_v21 = vmul.f32 1.6732632, %v2384_v19  ;;  %v2387_v22 = vadd.f32 -1.0, %v2820_v20  ;;  %v1109_v30 = vsel %vm1061_vm15, %v3256_v43, %v1101_v24  ;;  %v1291_v24 = vpop.permute.xlu0 %1290 }
 0x215   : > { %v1117_v35 = vmul.f32 1.050701, %v1109_v30  ;;  %v1295_v30 = vpop.permute.xlu1 %1294 }
 0x216   : > { %v2822_v23 = vpop.eup %2821  ;;  %v1102_v25 = vmul.f32 1.6732632, %v2387_v22  ;;  %v1107_v27 = vsel %vm1059_vm13, %v1041_v46, %v1099_v21 }
 0x217   : > { %v2385_v26 = vadd.f32 -1.0, %v2822_v23  ;;  %v1115_v33 = vmul.f32 1.050701, %v1107_v27 }
 0x218   : > { %v1110_v28 = vsel %vm1062_vm14, %v1052_v49, %v1102_v25 }
 0x219   : > { %v1100_v29 = vmul.f32 1.6732632, %v2385_v26  ;;  %v1118_v31 = vmul.f32 1.050701, %v1110_v28 }
 0x21b   : > { %v1108_v32 = vsel %vm1060_vm0, %v1044_v59, %v1100_v29  ;;  %v1122_v37 = vpack.c.bf16 %v1118_v31, %v1117_v35 }
 0x21c   : > { %v1116_v34 = vmul.f32 1.050701, %v1108_v32  ;;  %v1297_v32 = vpop.permute.xlu0 %1296 }
 0x21e   : > { %v1121_v36 = vpack.c.bf16 %v1116_v34, %v1115_v33 }
 0x220   : > { %2595 = vmatprep.mubr.msk.bf16.mxu1 %vm1162_vm12, %v1121_v36  ;;  %v1299_v36 = vpop.permute.xlu1 %1298 }
 0x221   : > { %2596 = vmatmul.mubr.msk.bf16.gmra.mxu1 %vm1162_vm12, %v1122_v37 }
 0x2d0   : > { %v2593_v40 = vpop.f32.mrf.mxu1 }
 0x2d1   : > { %v3275_v41 = vadd.f32 %v2593_v40, %v2388_v39 }
 0x2d2   : > { %v1209_v42 = vpop.f32.mrf.mxu1 }
 0x2d3   : > { %v1242_v43 = vmul.f32 0.5, %v3275_v41  ;;  %v2005_v44 = vsel %vm1380_vm1, %v3275_v41, 0.0  ;;  %v3280_v45 = vadd.f32 %v2388_v39, %v1209_v42 }
 0x2d4   : > { %2026 = vst [vmem:[%s3282_s25 + $0x38] sm:$0xff] %v2005_v44  ;;  %v2594_v46 = vpop.f32.mrf.mxu1 }
 0x2d5   : > { %v1240_v47 = vmul.f32 0.5, %v3280_v45  ;;  %v2003_v48 = vsel %vm1380_vm1, %v3280_v45, 0.0  ;;  %v3288_v50 = vadd.f32 %v2594_v46, %v2388_v39  ;;  %v1252_v51 = vmul.f32 1.442695, %v1242_v43  ;;  %v1301_v43 = vpop.permute.xlu0 %1300 }
 0x2d6   : > { %2020 = vst [vmem:[%s3282_s25 + $0x8] sm:$0xff] %v2003_v48  ;;  %v1212_v52 = vpop.f32.mrf.mxu1  ;;  %v1303_v48 = vpop.permute.xlu1 %1302 }
 0x2d7   : > { %v1248_v49 = vmul.f32 1.442695, %v1240_v47  ;;  %v1243_v53 = vmul.f32 0.5, %v3288_v50  ;;  %v2006_v54 = vsel %vm1380_vm1, %v3288_v50, 0.0  ;;  %v3294_v55 = vadd.f32 %v2388_v39, %v1212_v52 }
 0x2d8   : > { %2029 = vst [vmem:[%s3282_s25 + $0x50] sm:$0xff] %v2006_v54 }
 0x2d9   : > { %v1254_v56 = vmul.f32 1.442695, %v1243_v53  ;;  %v1241_v57 = vmul.f32 0.5, %v3294_v55  ;;  %v2004_v58 = vsel %vm1380_vm1, %v3294_v55, 0.0  ;;  %2823 = vpow2.f32 %v1248_v49 }
 0x2da   : > { %2023 = vst [vmem:[%s3282_s25 + $0x20] sm:$0xff] %v2004_v58  ;;  %2825 = vpow2.f32 %v1252_v51 }
 0x2db   : > { %v1250_v59 = vmul.f32 1.442695, %v1241_v57  ;;  %2827 = vpow2.f32 %v1254_v56 }
 0x2dd   : > { %2829 = vpow2.f32 %v1250_v59 }
 0x2e1   : > { %v2597_v60 = vpop.f32.mrf.mxu1 }
 0x2e2   : > { %v3301_v61 = vadd.f32 %v2597_v60, %v2388_v39 }
 0x2e3   : > { %v1225_v62 = vpop.f32.mrf.mxu1 }
 0x2e4   : > { %v1246_v63 = vmul.f32 0.5, %v3301_v61  ;;  %v2009_v0 = vsel %vm1380_vm1, %v3301_v61, 0.0  ;;  %v3306_v2 = vadd.f32 %v2388_v39, %v1225_v62 }
 0x2e5   : > { %2038 = vst [vmem:[%s3282_s25 + $0x98] sm:$0xff] %v2009_v0  ;;  %v2598_v1 = vpop.f32.mrf.mxu1 }
 0x2e6   : > { %v1260_v4 = vmul.f32 1.442695, %v1246_v63  ;;  %v1244_v5 = vmul.f32 0.5, %v3306_v2  ;;  %v2007_v6 = vsel %vm1380_vm1, %v3306_v2, 0.0  ;;  %v3312_v7 = vadd.f32 %v2598_v1, %v2388_v39  ;;  %v2824_v8 = vpop.eup %2823 }
 0x2e7   : > { %2032 = vst [vmem:[%s3282_s25 + $0x68] sm:$0xff] %v2007_v6  ;;  %v1228_v9 = vpop.f32.mrf.mxu1  ;;  %v2826_v10 = vpop.eup %2825  ;;  %v1264_v16 = vadd.f32 0.0001, %v2824_v8 }
 0x2e8   : > { %v1256_v11 = vmul.f32 1.442695, %v1244_v5  ;;  %v1247_v12 = vmul.f32 0.5, %v3312_v7  ;;  %v2010_v13 = vsel %vm1380_vm1, %v3312_v7, 0.0  ;;  %v3318_v14 = vadd.f32 %v2388_v39, %v1228_v9  ;;  %v2828_v17 = vpop.eup %2827 }
 0x2e9   : > { %2041 = vst [vmem:[%s3282_s25 + $0xb0] sm:$0xff] %v2010_v13  ;;  %2831 = vpow2.f32 %v1260_v4  ;;  %v1266_v22 = vadd.f32 0.0001, %v2826_v10  ;;  %v1312_v23 = vmul.f32 %v1289_v3, %v1264_v16  ;;  %v1267_v27 = vadd.f32 0.0001, %v2828_v17 }
 0x2ea   : > { %v1262_v18 = vmul.f32 1.442695, %v1247_v12  ;;  %v1245_v19 = vmul.f32 0.5, %v3318_v14  ;;  %v2008_v20 = vsel %vm1380_vm1, %v3318_v14, 0.0  ;;  %v2830_v21 = vpop.eup %2829  ;;  %2833 = vpow2.f32 %v1256_v11 }
 0x2eb   : > { %2035 = vst [vmem:[%s3282_s25 + $0x80] sm:$0xff] %v2008_v20  ;;  %v1265_v26 = vadd.f32 0.0001, %v2830_v21  ;;  %1328 = vrot.lane.b32.xlu0 %v1312_v23, %s2998_s27  ;;  %v1314_v29 = vmul.f32 %v1293_v15, %v1266_v22  ;;  %v1315_v31 = vmul.f32 %v1295_v30, %v1267_v27  ;;  %v2765_v30 = vld [vmem:[%s3704_s10 + $0x8] sm:$0xff]  }
 0x2ec   : > { %v1258_v25 = vmul.f32 1.442695, %v1245_v19  ;;  %2835 = vpow2.f32 %v1262_v18 }
 0x2ed   : > { %v1313_v28 = vmul.f32 %v1291_v24, %v1265_v26 }
 0x2ee   : > { %2837 = vpow2.f32 %v1258_v25 }
 0x2ef   : > { %1330 = vrot.lane.b32.xlu1 %v1313_v28, %s2998_s27  ;;  %1332 = vrot.lane.b32.xlu0 %v1314_v29, %s2998_s27  ;;  %v2763_v28 = vld [vmem:[%s3704_s10 + $0x18] sm:$0xff]   ;;  %v2764_v29 = vld [vmem:[%s3704_s10 + $0x10] sm:$0xff]  }
 0x2f0   : > { %2609 = vmatprep.subr.bf16.mxu1 %v2763_v28 }
 0x2f3   : > { %1334 = vrot.lane.b32.xlu1 %v1315_v31, %s2998_s27  ;;  %v2766_v31 = vld [vmem:[%s3704_s10] sm:$0xff]  }
 0x2f6   : > { %v2832_v33 = vpop.eup %2831 }
 0x2f7   : > { %v2834_v34 = vpop.eup %2833  ;;  %v1270_v40 = vadd.f32 0.0001, %v2832_v33 }
 0x2f8   : > { %v1268_v35 = vadd.f32 0.0001, %v2834_v34  ;;  %v1366_v34 = vld [vmem:[%s3402_s21] sm:$0xff] }
 0x2f9   : > { %v2836_v37 = vpop.eup %2835  ;;  %v1318_v47 = vmul.f32 %v1301_v43, %v1270_v40 }
 0x2fa   : > { %v1316_v39 = vmul.f32 %v1297_v32, %v1268_v35  ;;  %v1271_v46 = vadd.f32 0.0001, %v2836_v37  ;;  %v1368_v32 = vld [vmem:[%s3402_s21 + $0x10] sm:$0xff]  ;;  %v1369_v37 = vld [vmem:[%s3402_s21 + $0x18] sm:$0xff] }
 0x2fb   : > { %v2838_v38 = vpop.eup %2837 }
 0x2fc   : > { %v1269_v42 = vadd.f32 0.0001, %v2838_v38  ;;  %1336 = vrot.lane.b32.xlu0 %v1316_v39, %s2998_s27  ;;  %v1319_v51 = vmul.f32 %v1303_v48, %v1271_v46 }
 0x2fe   : > { %v1317_v44 = vmul.f32 %v1299_v36, %v1269_v42 }
 0x300   : > { %1338 = vrot.lane.b32.xlu1 %v1317_v44, %s2998_s27  ;;  %1340 = vrot.lane.b32.xlu0 %v1318_v47, %s2998_s27 }
 0x304   : > { %1342 = vrot.lane.b32.xlu1 %v1319_v51, %s2998_s27  ;;  %1971 = vrot.lane.b32.xlu0 %v1264_v16, %s2998_s27 }
 0x308   : > { %1973 = vrot.lane.b32.xlu1 %v1265_v26, %s2998_s27  ;;  %1975 = vrot.lane.b32.xlu0 %v1266_v22, %s2998_s27 }
 0x30c   : > { %1977 = vrot.lane.b32.xlu1 %v1267_v27, %s2998_s27  ;;  %1979 = vrot.lane.b32.xlu0 %v1268_v35, %s2998_s27 }
 0x310   : > { %1981 = vrot.lane.b32.xlu1 %v1269_v42, %s2998_s27  ;;  %1983 = vrot.lane.b32.xlu0 %v1270_v40, %s2998_s27 }
 0x314   : > { %1985 = vrot.lane.b32.xlu1 %v1271_v46, %s2998_s27  ;;  %v1367_v46 = vld [vmem:[%s3402_s21 + $0x8] sm:$0xff]  ;;  %s2338_s27 = sshll.u32 %s3266_s15, 6 }
 0x315   : > { %s3500_s18 = scalar_lea.vmem [#allocation2], %s2338_s27 }
 0x35d   : > { %v1329_v52 = vpop.permute.xlu0 %1328 }
 0x35e   : > { %v1352_v49 = vadd.f32 %v1329_v52, %v3280_v45 }
 0x360   : > { %v1995_v53 = vsel %vm1380_vm1, %v1352_v49, 0.0 }
 0x361   : > { %v1331_v54 = vpop.permute.xlu1 %1330  ;;  %2019 = vst [vmem:[%s3282_s25] sm:$0xff] %v1995_v53  ;;  %v1333_v57 = vpop.permute.xlu0 %1332 }
 0x362   : > { %v1353_v56 = vadd.f32 %v1331_v54, %v3294_v55  ;;  %v1354_v58 = vadd.f32 %v1333_v57, %v3275_v41 }
 0x364   : > { %v1360_v59 = vpack.c.bf16 %v1353_v56, %v1352_v49  ;;  %v1996_v60 = vsel %vm1380_vm1, %v1353_v56, 0.0  ;;  %v1997_v62 = vsel %vm1380_vm1, %v1354_v58, 0.0  ;;  %v1372_v56 = vld [vmem:[%s3402_s21 + $0x30] sm:$0xff] }
 0x365   : > { %2022 = vst [vmem:[%s3282_s25 + $0x18] sm:$0xff] %v1996_v60  ;;  %v1335_v63 = vpop.permute.xlu1 %1334  ;;  %2025 = vst [vmem:[%s3282_s25 + $0x30] sm:$0xff] %v1997_v62 }
 0x366   : > { %v1355_v45 = vadd.f32 %v1335_v63, %v3288_v50  ;;  %2601 = vmatprep.mubr.msk.bf16.mxu1 %vm1380_vm1, %v1360_v59 }
 0x368   : > { %v1361_v0 = vpack.c.bf16 %v1355_v45, %v1354_v58  ;;  %v1998_v55 = vsel %vm1380_vm1, %v1355_v45, 0.0  ;;  %v1370_v58 = vld [vmem:[%s3402_s21 + $0x20] sm:$0xff]  ;;  %v1373_v45 = vld [vmem:[%s3402_s21 + $0x38] sm:$0xff] }
 0x369   : > { %2028 = vst [vmem:[%s3282_s25 + $0x48] sm:$0xff] %v1998_v55 }
 0x36a   : > { %2602 = vmatmul.mubr.msk.bf16.vlgmr.msra.gmra.mxu1 %vm1380_vm1, %v1361_v0 }
 0x36b   : > { %2610 = vmatpush3.bf16.msra.mxu1 %v2763_v28 }
 0x36c   : > { %2611 = vmatprep.subr.bf16.mxu1 %v2764_v29 }
 0x36e   : > { %v1337_v41 = vpop.permute.xlu0 %1336 }
 0x36f   : > { %v1356_v1 = vadd.f32 %v1337_v41, %v3306_v2  ;;  %2612 = vmatpush3.bf16.msra.mxu1 %v2764_v29 }
 0x370   : > { %2613 = vmatprep.subr.bf16.mxu1 %v2765_v30 }
 0x371   : > { %v1999_v3 = vsel %vm1380_vm1, %v1356_v1, 0.0 }
 0x372   : > { %v1339_v4 = vpop.permute.xlu1 %1338  ;;  %2031 = vst [vmem:[%s3282_s25 + $0x60] sm:$0xff] %v1999_v3  ;;  %v1341_v5 = vpop.permute.xlu0 %1340  ;;  %v1371_v3 = vld [vmem:[%s3402_s21 + $0x28] sm:$0xff]  ;;  %s2056_s21 = ssub.s32 (%p3121_p5), 25, %s3135_s17 }
 0x373   : > { %v1357_v50 = vadd.f32 %v1339_v4, %v3318_v14  ;;  %v1358_v6 = vadd.f32 %v1341_v5, %v3301_v61  ;;  %2614 = vmatpush3.bf16.msra.mxu1 %v2765_v30  ;;  %p2057_p11 = scmp.lt.s32.totalorder (%p3121_p5), %s2056_s21, 8 }
 0x374   : > { %2615 = vmatprep.subr.bf16.mxu1 %v2766_v31 }
 0x375   : > { %v1362_v8 = vpack.c.bf16 %v1357_v50, %v1356_v1  ;;  %v2000_v9 = vsel %vm1380_vm1, %v1357_v50, 0.0  ;;  %v2001_v10 = vsel %vm1380_vm1, %v1358_v6, 0.0 }
 0x376   : > { %2034 = vst [vmem:[%s3282_s25 + $0x78] sm:$0xff] %v2000_v9  ;;  %v1343_v11 = vpop.permute.xlu1 %1342  ;;  %2037 = vst [vmem:[%s3282_s25 + $0x90] sm:$0xff] %v2001_v10  ;;  %v1972_v12 = vpop.permute.xlu0 %1971 }
 0x377   : > { %v1359_v2 = vadd.f32 %v1343_v11, %v3312_v7  ;;  %2605 = vmatprep.mubr.msk.bf16.mxu1 %vm1380_vm1, %v1362_v8  ;;  %v2011_v13 = vsel %vm1380_vm1, %v1972_v12, 0.0  ;;  %2616 = vmatpush3.bf16.msra.mxu1 %v2766_v31 }
 0x378   : > { %2021 = vst [vmem:[%s3282_s25 + $0x10] sm:$0xff] %v2011_v13 }
 0x379   : > { %v1363_v14 = vpack.c.bf16 %v1359_v2, %v1358_v6  ;;  %v2002_v61 = vsel %vm1380_vm1, %v1359_v2, 0.0 }
 0x37a   : > { %2040 = vst [vmem:[%s3282_s25 + $0xa8] sm:$0xff] %v2002_v61  ;;  %v1974_v15 = vpop.permute.xlu1 %1973  ;;  %v1976_v17 = vpop.permute.xlu0 %1975 }
 0x37b   : > { %v2012_v16 = vsel %vm1380_vm1, %v1974_v15, 0.0  ;;  %2606 = vmatmul.mubr.msk.bf16.gmra.mxu1 %vm1380_vm1, %v1363_v14  ;;  %v2013_v7 = vsel %vm1380_vm1, %v1976_v17, 0.0 }
 0x37c   : > { %2024 = vst [vmem:[%s3282_s25 + $0x28] sm:$0xff] %v2012_v16  ;;  %2027 = vst [vmem:[%s3282_s25 + $0x40] sm:$0xff] %v2013_v7 }
 0x37e   : > { %v1978_v18 = vpop.permute.xlu1 %1977  ;;  %v1980_v20 = vpop.permute.xlu0 %1979 }
 0x37f   : > { %v2014_v19 = vsel %vm1380_vm1, %v1978_v18, 0.0  ;;  %v2015_v21 = vsel %vm1380_vm1, %v1980_v20, 0.0 }
 0x380   : > { %2030 = vst [vmem:[%s3282_s25 + $0x58] sm:$0xff] %v2014_v19  ;;  %2033 = vst [vmem:[%s3282_s25 + $0x70] sm:$0xff] %v2015_v21 }
 0x382   : > { %v1982_v22 = vpop.permute.xlu1 %1981  ;;  %v1984_v24 = vpop.permute.xlu0 %1983 }
 0x383   : > { %v2016_v23 = vsel %vm1380_vm1, %v1982_v22, 0.0  ;;  %v2017_v25 = vsel %vm1380_vm1, %v1984_v24, 0.0 }
 0x384   : > { %2036 = vst [vmem:[%s3282_s25 + $0x88] sm:$0xff] %v2016_v23  ;;  %2039 = vst [vmem:[%s3282_s25 + $0xa0] sm:$0xff] %v2017_v25 }
 0x386   : > { %v1986_v26 = vpop.permute.xlu1 %1985 }
 0x387   : > { %v2018_v27 = vsel %vm1380_vm1, %v1986_v26, 0.0 }
 0x388   : > { %2042 = vst [vmem:[%s3282_s25 + $0xb8] sm:$0xff] %v2018_v27 }
 0x42a   : > { %v2603_v33 = vpop.f32.mrf.mxu1 }
 0x42b   : > { %v3406_v35 = vadd.f32 %v2603_v33, %v1368_v32 }
 0x42c   : > { %v1427_v36 = vpop.f32.mrf.mxu1 }
 0x42d   : > { %v1468_v38 = vmin.f32 %v3406_v35, 0.0  ;;  %v1428_v39 = vadd.f32 %v1427_v36, %v1366_v34  ;;  %vm1460_vm4 = vcmp.gt.f32.partialorder %v3406_v35, 0.0 }
 0x42e   : > { %v2604_v40 = vpop.f32.mrf.mxu1 }
 0x42f   : > { %v1478_v42 = vmul.f32 1.442695, %v1468_v38  ;;  %v1466_v43 = vmin.f32 %v1428_v39, 0.0  ;;  %v1439_v44 = vadd.f32 %v2604_v40, %v1369_v37  ;;  %vm1458_vm3 = vcmp.gt.f32.partialorder %v1428_v39, 0.0 }
 0x430   : > { %v1430_v47 = vpop.f32.mrf.mxu1 }
 0x431   : > { %2839 = vpow2.f32 %v1478_v42  ;;  %v1474_v48 = vmul.f32 1.442695, %v1466_v43  ;;  %v1469_v51 = vmin.f32 %v1439_v44, 0.0  ;;  %v1431_v52 = vadd.f32 %v1430_v47, %v1367_v46 }
 0x432   : > { %vm1461_vm2 = vcmp.gt.f32.partialorder %v1439_v44, 0.0 }
 0x433   : > { %2841 = vpow2.f32 %v1474_v48  ;;  %v1480_v49 = vmul.f32 1.442695, %v1469_v51  ;;  %v1467_v53 = vmin.f32 %v1431_v52, 0.0  ;;  %vm1459_vm5 = vcmp.gt.f32.partialorder %v1431_v52, 0.0 }
 0x435   : > { %2843 = vpow2.f32 %v1480_v49  ;;  %v1476_v54 = vmul.f32 1.442695, %v1467_v53 }
 0x437   : > { %2845 = vpow2.f32 %v1476_v54 }
 0x43b   : > { %v2607_v57 = vpop.f32.mrf.mxu1 }
 0x43c   : > { %v3413_v59 = vadd.f32 %v2607_v57, %v1372_v56  ;;  %v2769_v56 = vld [vmem:[%s3706_s12 + $0x74] ss:$8 sps:$4 sm:$0xff]   ;;  %v2767_v57 = vld [vmem:[%s3706_s12 + $0x70] ss:$8 sps:$4 sm:$0xff]  }
 0x43d   : > { %v1443_v60 = vpop.f32.mrf.mxu1  ;;  %1818 = vmatprep.subr.bf16.mxu0 %v2769_v56 }
 0x43e   : > { %v1472_v62 = vmin.f32 %v3413_v59, 0.0  ;;  %v1444_v63 = vadd.f32 %v1443_v60, %v1370_v58  ;;  %v2840_v0 = vpop.eup %2839  ;;  %vm1464_vm8 = vcmp.gt.f32.partialorder %v3413_v59, 0.0  ;;  %1819 = vmatpush1.bf16.msra.mxu0 %v2767_v57  ;;  %v2772_v58 = vld [vmem:[%s3706_s12 + $0x64] ss:$8 sps:$4 sm:$0xff]   ;;  %v2775_v60 = vld [vmem:[%s3706_s12 + $0x54] ss:$8 sps:$4 sm:$0xff]  }
 0x43f   : > { %v2608_v55 = vpop.f32.mrf.mxu1  ;;  %v2404_v6 = vadd.f32 -1.0, %v2840_v0  ;;  %1820 = vmatprep.subr.bf16.mxu0 %v2772_v58  ;;  %v2781_v0 = vld [vmem:[%s3706_s12 + $0x34] ss:$8 sps:$4 sm:$0xff]  }
 0x440   : > { %v1486_v41 = vmul.f32 1.442695, %v1472_v62  ;;  %v1470_v1 = vmin.f32 %v1444_v63, 0.0  ;;  %v2842_v4 = vpop.eup %2841  ;;  %v1455_v50 = vadd.f32 %v2608_v55, %v1373_v45  ;;  %vm1462_vm6 = vcmp.gt.f32.partialorder %v1444_v63, 0.0  ;;  %v2773_v62 = vld [vmem:[%s3706_s12 + $0x50] ss:$8 sps:$4 sm:$0xff]  }
 0x441   : > { %v1446_v5 = vpop.f32.mrf.mxu1  ;;  %v2402_v8 = vadd.f32 -1.0, %v2842_v4  ;;  %v1500_v16 = vmul.f32 1.6732632, %v2404_v6  ;;  %v2776_v45 = vld [vmem:[%s3706_s12 + $0x40] ss:$8 sps:$4 sm:$0xff]   ;;  %v2999_v6 = vmov 0  }
 0x442   : > { %2847 = vpow2.f32 %v1486_v41  ;;  %v1482_v9 = vmul.f32 1.442695, %v1470_v1  ;;  %v2844_v10 = vpop.eup %2843  ;;  %v1473_v11 = vmin.f32 %v1455_v50, 0.0  ;;  %v1447_v2 = vadd.f32 %v1446_v5, %v1371_v3  ;;  %v2779_v55 = vld [vmem:[%s3706_s12 + $0x30] ss:$8 sps:$4 sm:$0xff]   ;;  %1850 = vmatprep.mubr.bf16.mxu0 %v2999_v6 }
 0x443   : > { %v2405_v12 = vadd.f32 -1.0, %v2844_v10  ;;  %v1498_v13 = vmul.f32 1.6732632, %v2402_v8  ;;  %v1508_v22 = vsel %vm1460_vm4, %v3406_v35, %v1500_v16  ;;  %vm1465_vm7 = vcmp.gt.f32.partialorder %v1455_v50, 0.0  ;;  %v2784_v41 = vld [vmem:[%s3706_s12 + $0x24] ss:$8 sps:$4 sm:$0xff]  }
 0x444   : > { %2849 = vpow2.f32 %v1482_v9  ;;  %v1488_v14 = vmul.f32 1.442695, %v1473_v11  ;;  %v1471_v61 = vmin.f32 %v1447_v2, 0.0  ;;  %v2846_v15 = vpop.eup %2845  ;;  %v1516_v27 = vmul.f32 1.050701, %v1508_v22 }
 0x445   : > { %v1501_v17 = vmul.f32 1.6732632, %v2405_v12  ;;  %v2403_v7 = vadd.f32 -1.0, %v2846_v15  ;;  %v1506_v20 = vsel %vm1458_vm3, %v1428_v39, %v1498_v13  ;;  %vm1463_vm9 = vcmp.gt.f32.partialorder %v1447_v2, 0.0  ;;  %v2782_v1 = vld [vmem:[%s3706_s12 + $0x20] ss:$8 sps:$4 sm:$0xff]  }
 0x446   : > { %2851 = vpow2.f32 %v1488_v14  ;;  %v1484_v18 = vmul.f32 1.442695, %v1471_v61  ;;  %v1514_v25 = vmul.f32 1.050701, %v1506_v20  ;;  %v2787_v3 = vld [vmem:[%s3706_s12 + $0x14] ss:$8 sps:$4 sm:$0xff]  }
 0x447   : > { %v1509_v19 = vsel %vm1461_vm2, %v1439_v44, %v1501_v17  ;;  %v1499_v21 = vmul.f32 1.6732632, %v2403_v7  ;;  %v2785_v4 = vld [vmem:[%s3706_s12 + $0x10] ss:$8 sps:$4 sm:$0xff]   ;;  %v2788_v5 = vld [vmem:[%s3706_s12] ss:$8 sps:$4 sm:$0xff]  }
 0x448   : > { %2853 = vpow2.f32 %v1484_v18  ;;  %v1517_v23 = vmul.f32 1.050701, %v1509_v19  ;;  %v2410_v8 = vld [vmem:[%s3705_s11] ss:$0 sm:$0xff] }
 0x449   : > { %v1507_v24 = vsel %vm1459_vm5, %v1431_v52, %v1499_v21 }
 0x44a   : > { %v1515_v26 = vmul.f32 1.050701, %v1507_v24  ;;  %v1523_v30 = vpack.c.bf16 %v1517_v23, %v1516_v27 }
 0x44c   : > { %v1522_v28 = vpack.c.bf16 %v1515_v26, %v1514_v25 }
 0x44e   : > { %2617 = vmatprep.mubr.msk.bf16.mxu1 %vm1162_vm12, %v1522_v28 }
 0x44f   : > { %v2848_v29 = vpop.eup %2847  ;;  %2618 = vmatmul.mubr.msk.bf16.vlgmr.msra.gmra.mxu1 %vm1162_vm12, %v1523_v30 }
 0x450   : > { %v2408_v32 = vadd.f32 -1.0, %v2848_v29 }
 0x451   : > { %v2850_v31 = vpop.eup %2849 }
 0x452   : > { %v2406_v33 = vadd.f32 -1.0, %v2850_v31  ;;  %v1504_v38 = vmul.f32 1.6732632, %v2408_v32 }
 0x453   : > { %v2852_v34 = vpop.eup %2851 }
 0x454   : > { %v1502_v36 = vmul.f32 1.6732632, %v2406_v33  ;;  %v2409_v37 = vadd.f32 -1.0, %v2852_v34  ;;  %v1512_v46 = vsel %vm1464_vm8, %v3413_v59, %v1504_v38  ;;  %v2770_v59 = vld [vmem:[%s3706_s12 + $0x60] ss:$8 sps:$4 sm:$0xff]  }
 0x455   : > { %v2854_v35 = vpop.eup %2853  ;;  %v1520_v49 = vmul.f32 1.050701, %v1512_v46  ;;  %1821 = vmatpush1.bf16.msra.mxu0 %v2770_v59 }
 0x456   : > { %v1505_v39 = vmul.f32 1.6732632, %v2409_v37  ;;  %v2407_v40 = vadd.f32 -1.0, %v2854_v35  ;;  %v1510_v42 = vsel %vm1462_vm6, %v1444_v63, %v1502_v36  ;;  %1822 = vmatprep.subr.bf16.mxu0 %v2775_v60  ;;  %v2778_v63 = vld [vmem:[%s3706_s12 + $0x44] ss:$8 sps:$4 sm:$0xff]  }
 0x457   : > { %v1518_v51 = vmul.f32 1.050701, %v1510_v42 }
 0x458   : > { %v1513_v43 = vsel %vm1465_vm7, %v1455_v50, %v1505_v39  ;;  %v1503_v44 = vmul.f32 1.6732632, %v2407_v40  ;;  %v2790_v50 = vld [vmem:[%s3706_s12 + $0x4] ss:$8 sps:$4 sm:$0xff]  }
 0x459   : > { %v1521_v47 = vmul.f32 1.050701, %v1513_v43  ;;  %1823 = vmatpush1.bf16.msra.mxu0 %v2773_v62 }
 0x45a   : > { %v1511_v48 = vsel %vm1463_vm9, %v1447_v2, %v1503_v44  ;;  %1824 = vmatprep.subr.bf16.mxu0 %v2778_v63 }
 0x45b   : > { %v1519_v52 = vmul.f32 1.050701, %v1511_v48  ;;  %v1525_v54 = vpack.c.bf16 %v1521_v47, %v1520_v49 }
 0x45d   : > { %v1524_v53 = vpack.c.bf16 %v1519_v52, %v1518_v51  ;;  %1825 = vmatpush1.bf16.msra.mxu0 %v2776_v45 }
 0x45e   : > { %1826 = vmatprep.subr.bf16.mxu0 %v2781_v0 }
 0x45f   : > { %2621 = vmatprep.mubr.msk.bf16.mxu1 %vm1162_vm12, %v1524_v53 }
 0x460   : > { %2622 = vmatmul.mubr.msk.bf16.gmra.mxu1 %vm1162_vm12, %v1525_v54 }
 0x461   : > { %1827 = vmatpush1.bf16.msra.mxu0 %v2779_v55 }
 0x462   : > { %1828 = vmatprep.subr.bf16.mxu0 %v2784_v41 }
 0x465   : > { %1829 = vmatpush1.bf16.msra.mxu0 %v2782_v1 }
 0x466   : > { %1830 = vmatprep.subr.bf16.mxu0 %v2787_v3 }
 0x469   : > { %1831 = vmatpush1.bf16.msra.mxu0 %v2785_v4 }
 0x46a   : > { %1832 = vmatprep.subr.bf16.mxu0 %v2790_v50 }
 0x46d   : > { %1833 = vmatpush1.bf16.msra.mxu0 %v2788_v5 }
 0x50f   : > { %v2619_v9 = vpop.f32.mrf.mxu1 }
 0x510   : > { %v3478_v10 = vadd.f32 %v2619_v9, %v2410_v8 }
 0x511   : > { %v1611_v11 = vpop.f32.mrf.mxu1 }
 0x512   : > { %v1612_v2 = vadd.f32 %v2410_v8, %v1611_v11  ;;  %v1652_v13 = vmin.f32 %v3478_v10, 0.0  ;;  %vm1644_vm13 = vcmp.gt.f32.partialorder %v3478_v10, 0.0 }
 0x513   : > { %v2620_v12 = vpop.f32.mrf.mxu1 }
 0x514   : > { %v1650_v14 = vmin.f32 %v1612_v2, 0.0  ;;  %v1623_v61 = vadd.f32 %v2620_v12, %v2410_v8  ;;  %v1662_v18 = vmul.f32 1.442695, %v1652_v13  ;;  %vm1642_vm10 = vcmp.gt.f32.partialorder %v1612_v2, 0.0 }
 0x515   : > { %v1614_v15 = vpop.f32.mrf.mxu1 }
 0x516   : > { %v1658_v16 = vmul.f32 1.442695, %v1650_v14  ;;  %v1653_v17 = vmin.f32 %v1623_v61, 0.0  ;;  %v1615_v7 = vadd.f32 %v2410_v8, %v1614_v15  ;;  %vm1645_vm12 = vcmp.gt.f32.partialorder %v1623_v61, 0.0 }
 0x518   : > { %2855 = vpow2.f32 %v1658_v16  ;;  %v1664_v19 = vmul.f32 1.442695, %v1653_v17  ;;  %v1651_v20 = vmin.f32 %v1615_v7, 0.0  ;;  %vm1643_vm11 = vcmp.gt.f32.partialorder %v1615_v7, 0.0 }
 0x51a   : > { %2857 = vpow2.f32 %v1664_v19  ;;  %v1660_v21 = vmul.f32 1.442695, %v1651_v20  ;;  %v1728_v19 = vlaneseq }
 0x51b   : > { %2859 = vpow2.f32 %v1662_v18 }
 0x51c   : > { %2861 = vpow2.f32 %v1660_v21  ;;  %v1729_v20 = vshrl.u32 %v1728_v19, 7 }
 0x51e   : > { %v1730_v21 = vsub.s32 0, %v1729_v20 }
 0x520   : > { %v2623_v22 = vpop.f32.mrf.mxu1 }
 0x521   : > { %v3481_v23 = vadd.f32 %v2623_v22, %v2410_v8  ;;  %v1726_v22 = vld [vmem:[%s3707_s13] sm:$0x3] }
 0x522   : > { %v1627_v24 = vpop.f32.mrf.mxu1 }
 0x523   : > { %v1628_v25 = vadd.f32 %v2410_v8, %v1627_v24  ;;  %v1656_v27 = vmin.f32 %v3481_v23, 0.0  ;;  %vm1648_vm1 = vcmp.gt.f32.partialorder %v3481_v23, 0.0  ;;  %v1734_v24 = vsub.s32 1, %v1729_v20 }
 0x524   : > { %v2624_v26 = vpop.f32.mrf.mxu1 }
 0x525   : > { %v1654_v28 = vmin.f32 %v1628_v25, 0.0  ;;  %v2856_v29 = vpop.eup %2855  ;;  %v3484_v30 = vadd.f32 %v2624_v26, %v2410_v8  ;;  %v1670_v35 = vmul.f32 1.442695, %v1656_v27  ;;  %vm1646_vm14 = vcmp.gt.f32.partialorder %v1628_v25, 0.0 }
 0x526   : > { %v1630_v31 = vpop.f32.mrf.mxu1  ;;  %v2419_v32 = vadd.f32 -1.0, %v2856_v29  ;;  %v1735_v26 = vrot.slane %v1726_v22, %v1734_v24 }
 0x527   : > { %v1666_v33 = vmul.f32 1.442695, %v1654_v28  ;;  %v1657_v34 = vmin.f32 %v3484_v30, 0.0  ;;  %v1631_v36 = vadd.f32 %v2410_v8, %v1630_v31  ;;  %v2858_v37 = vpop.eup %2857  ;;  %vm1649_vm0 = vcmp.gt.f32.partialorder %v3484_v30, 0.0 }
 0x528   : > { %v2860_v38 = vpop.eup %2859  ;;  %v1682_v39 = vmul.f32 1.6732632, %v2419_v32  ;;  %v2422_v44 = vadd.f32 -1.0, %v2858_v37 }
 0x529   : > { %2863 = vpow2.f32 %v1666_v33  ;;  %v1672_v40 = vmul.f32 1.442695, %v1657_v34  ;;  %v1655_v42 = vmin.f32 %v1631_v36, 0.0  ;;  %v2862_v43 = vpop.eup %2861  ;;  %v2421_v48 = vadd.f32 -1.0, %v2860_v38 }
 0x52a   : > { %v2420_v46 = vadd.f32 -1.0, %v2862_v43  ;;  %v1690_v51 = vsel %vm1642_vm10, %v1612_v2, %v1682_v39  ;;  %v1685_v49 = vmul.f32 1.6732632, %v2422_v44  ;;  %vm1647_vm15 = vcmp.gt.f32.partialorder %v1631_v36, 0.0 }
 0x52b   : > { %2865 = vpow2.f32 %v1672_v40  ;;  %v1668_v47 = vmul.f32 1.442695, %v1655_v42  ;;  %v1698_v54 = vmul.f32 1.050701, %v1690_v51  ;;  %v1684_v57 = vmul.f32 1.6732632, %v2421_v48 }
 0x52c   : > { %2867 = vpow2.f32 %v1670_v35  ;;  %v1683_v52 = vmul.f32 1.6732632, %v2420_v46  ;;  %v1693_v59 = vsel %vm1645_vm12, %v1623_v61, %v1685_v49 }
 0x52d   : > { %2869 = vpow2.f32 %v1668_v47  ;;  %v1692_v62 = vsel %vm1644_vm13, %v3478_v10, %v1684_v57  ;;  %v1701_v63 = vmul.f32 1.050701, %v1693_v59 }
 0x52e   : > { %v1691_v53 = vsel %vm1643_vm11, %v1615_v7, %v1683_v52  ;;  %v1700_v55 = vmul.f32 1.050701, %v1692_v62 }
 0x52f   : > { %v1699_v56 = vmul.f32 1.050701, %v1691_v53 }
 0x530   : > { %v1707_v4 = vpack.c.bf16 %v1701_v63, %v1700_v55 }
 0x531   : > { %v1706_v58 = vpack.c.bf16 %v1699_v56, %v1698_v54 }
 0x533   : > { %1851 = vmatmul.mubr.bf16.vlgmr.msra.gmra.mxu0 %v1706_v58 }
 0x534   : > { %1860 = vmatprep.mubr.bf16.mxu0 %v2999_v6 }
 0x536   : > { %v2864_v60 = vpop.eup %2863 }
 0x537   : > { %v2423_v45 = vadd.f32 -1.0, %v2864_v60 }
 0x538   : > { %v2866_v0 = vpop.eup %2865 }
 0x539   : > { %v2868_v41 = vpop.eup %2867  ;;  %v1686_v1 = vmul.f32 1.6732632, %v2423_v45  ;;  %v2426_v50 = vadd.f32 -1.0, %v2866_v0 }
 0x53a   : > { %v2870_v3 = vpop.eup %2869  ;;  %v2425_v8 = vadd.f32 -1.0, %v2868_v41 }
 0x53b   : > { %v2424_v5 = vadd.f32 -1.0, %v2870_v3  ;;  %1861 = vmatmul.mubr.bf16.gmra.mxu0 %v1707_v4  ;;  %v1694_v9 = vsel %vm1646_vm14, %v1628_v25, %v1686_v1  ;;  %v1689_v10 = vmul.f32 1.6732632, %v2426_v50  ;;  %v1731_v25 = vrot.slane %v1726_v22, %v1730_v21 }
 0x53c   : > { %1870 = vmatprep.mubr.bf16.mxu0 %v2999_v6  ;;  %v1702_v12 = vmul.f32 1.050701, %v1694_v9  ;;  %v1688_v14 = vmul.f32 1.6732632, %v2425_v8 }
 0x53d   : > { %v1687_v11 = vmul.f32 1.6732632, %v2424_v5  ;;  %v1697_v15 = vsel %vm1649_vm0, %v3484_v30, %v1689_v10 }
 0x53e   : > { %v1696_v16 = vsel %vm1648_vm1, %v3481_v23, %v1688_v14  ;;  %v1705_v17 = vmul.f32 1.050701, %v1697_v15 }
 0x53f   : > { %v1695_v2 = vsel %vm1647_vm15, %v1631_v36, %v1687_v11  ;;  %v1704_v7 = vmul.f32 1.050701, %v1696_v16 }
 0x540   : > { %v1703_v13 = vmul.f32 1.050701, %v1695_v2 }
 0x541   : > { %v1709_v18 = vpack.c.bf16 %v1705_v17, %v1704_v7 }
 0x542   : > { %v1708_v61 = vpack.c.bf16 %v1703_v13, %v1702_v12 }
 0x544   : > { %1871 = vmatmul.mubr.bf16.gmra.mxu0 %v1708_v61 }
 0x545   : > { %1880 = vmatprep.mubr.bf16.mxu0 %v2999_v6 }
 0x54c   : > { %1881 = vmatmul.mubr.bf16.gmra.mxu0 %v1709_v18 }
 0x5f3   : > { %v1852_v27 = vpop.f32.mrf.mxu0 }
 0x5f4   : > { %v1853_v28 = vadd.f32 %v1852_v27, %v1731_v25 }
 0x5f5   : > { %v1854_v23 = vpop.f32.mrf.mxu0 }
 0x5f6   : > { %v1855_v29 = vadd.f32 %v1854_v23, %v1735_v26  ;;  %v1891_v30 = vmax.f32 %v1853_v28, 0.0 }
 0x5f7   : > { %v1856_v6 = vpop.f32.mrf.mxu0 }
 0x5f8   : > { %v1892_v31 = vmax.f32 %v1855_v29, 0.0  ;;  %v1857_v32 = vadd.f32 %v1856_v6, %v1731_v25 }
 0x5f9   : > { %v1858_v33 = vpop.f32.mrf.mxu0 }
 0x5fa   : > { %v2475_v34 = vpack.c.bf16 %v1892_v31, %v1891_v30  ;;  %v1859_v36 = vadd.f32 %v1858_v33, %v1735_v26  ;;  %v1893_v35 = vmax.f32 %v1857_v32, 0.0 }
 0x5fb   : > { %v1862_v37 = vpop.f32.mrf.mxu0 }
 0x5fc   : > { %1955 = vst [vmem:[%s3500_s18] sm:$0xff] %v2475_v34  ;;  %v1894_v38 = vmax.f32 %v1859_v36, 0.0  ;;  %v1863_v39 = vadd.f32 %v1862_v37, %v1731_v25 }
 0x5fd   : > { %v1864_v40 = vpop.f32.mrf.mxu0 }
 0x5fe   : > { %v2476_v42 = vpack.c.bf16 %v1894_v38, %v1893_v35  ;;  %v1865_v43 = vadd.f32 %v1864_v40, %v1735_v26  ;;  %v1895_v46 = vmax.f32 %v1863_v39, 0.0 }
 0x5ff   : > { %v1866_v44 = vpop.f32.mrf.mxu0 }
 0x600   : > { %1956 = vst [vmem:[%s3500_s18 + $0x8] sm:$0xff] %v2476_v42  ;;  %v1896_v47 = vmax.f32 %v1865_v43, 0.0  ;;  %v1867_v48 = vadd.f32 %v1866_v44, %v1731_v25 }
 0x601   : > { %v1868_v51 = vpop.f32.mrf.mxu0 }
 0x602   : > { %v2477_v52 = vpack.c.bf16 %v1896_v47, %v1895_v46  ;;  %v1869_v49 = vadd.f32 %v1868_v51, %v1735_v26  ;;  %v1897_v54 = vmax.f32 %v1867_v48, 0.0 }
 0x604   : > { %v1872_v53 = vpop.f32.mrf.mxu0  ;;  %1957 = vst [vmem:[%s3500_s18 + $0x10] sm:$0xff] %v2477_v52  ;;  %v1898_v56 = vmax.f32 %v1869_v49, 0.0 }
 0x605   : > { %v1873_v57 = vadd.f32 %v1872_v53, %v1731_v25 }
 0x606   : > { %v1874_v58 = vpop.f32.mrf.mxu0  ;;  %v2478_v59 = vpack.c.bf16 %v1898_v56, %v1897_v54 }
 0x607   : > { %v1875_v60 = vadd.f32 %v1874_v58, %v1735_v26  ;;  %v1899_v63 = vmax.f32 %v1873_v57, 0.0 }
 0x608   : > { %v1876_v62 = vpop.f32.mrf.mxu0  ;;  %1958 = vst [vmem:[%s3500_s18 + $0x18] sm:$0xff] %v2478_v59 }
 0x609   : > { %v1900_v45 = vmax.f32 %v1875_v60, 0.0  ;;  %v1877_v0 = vadd.f32 %v1876_v62, %v1731_v25 }
 0x60a   : > { %v1878_v55 = vpop.f32.mrf.mxu0 }
 0x60b   : > { %v2479_v41 = vpack.c.bf16 %v1900_v45, %v1899_v63  ;;  %v1879_v1 = vadd.f32 %v1878_v55, %v1735_v26  ;;  %v1901_v4 = vmax.f32 %v1877_v0, 0.0 }
 0x60c   : > { %v1882_v3 = vpop.f32.mrf.mxu0 }
 0x60d   : > { %1959 = vst [vmem:[%s3500_s18 + $0x20] sm:$0xff] %v2479_v41  ;;  %v1902_v50 = vmax.f32 %v1879_v1, 0.0  ;;  %v1883_v5 = vadd.f32 %v1882_v3, %v1731_v25 }
 0x60e   : > { %v1884_v8 = vpop.f32.mrf.mxu0 }
 0x60f   : > { %v2480_v9 = vpack.c.bf16 %v1902_v50, %v1901_v4  ;;  %v1885_v11 = vadd.f32 %v1884_v8, %v1735_v26  ;;  %v1903_v2 = vmax.f32 %v1883_v5, 0.0 }
 0x610   : > { %v1886_v10 = vpop.f32.mrf.mxu0 }
 0x611   : > { %1960 = vst [vmem:[%s3500_s18 + $0x28] sm:$0xff] %v2480_v9  ;;  %v1904_v12 = vmax.f32 %v1885_v11, 0.0  ;;  %v1887_v13 = vadd.f32 %v1886_v10, %v1731_v25 }
 0x612   : > { %v1888_v14 = vpop.f32.mrf.mxu0 }
 0x613   : > { %v2481_v61 = vpack.c.bf16 %v1904_v12, %v1903_v2  ;;  %v1889_v15 = vadd.f32 %v1888_v14, %v1735_v26  ;;  %v1905_v16 = vmax.f32 %v1887_v13, 0.0 }
 0x615   : > { %1961 = vst [vmem:[%s3500_s18 + $0x30] sm:$0xff] %v2481_v61  ;;  %v1906_v17 = vmax.f32 %v1889_v15, 0.0  ;;  %2054 = sbr.rel (!%p3121_p5) target bundleno = 1590 (0x636), region = 80 }
 0x617   : > { %v2482_v7 = vpack.c.bf16 %v1906_v17, %v1905_v16 }
 0x619   : > { %1962 = vst [vmem:[%s3500_s18 + $0x38] sm:$0xff] %v2482_v7 }
 0x61a   : > { %s3748_s21 = smov (!%p2057_p11, %s2056_s21), 8 }
 0x61b   : > { %s3514_s23 = sshll.u32 %s3748_s21, 7 }
 0x61c   : > { %s2062_s30 = ssub.s32 1024, %s3514_s23 }
 0x61d   : > { %2063 = vsyncadd %s3716_s26, %s2062_s30  ;;  %p2455_p12 = scmp.ne.s32.totalorder %s3514_s23, 0  ;;  %s2485_s20 = sshll.u32 %s3104_s22, 10 }
 0x61e   : > { %s3524_s29 = scalar_lea.hbm %s3708_s14, %s2485_s20  ;;  %s2069_s27 = sshll.u32 %s3500_s18, 4  ;;  %s3527_s27 = int_to_ptr.vmem [resolvable:$true] %s2069_s27 }
 0x61f   : > { %s2871_s21 = scalar_lea.vmem %s3527_s27, %s3514_s23  ;;  %s3000_s30 = smov [#allocation2]  }
 0x620   : > { %p2872_p13 = scmp.ne.s32.totalorder %s3527_s27, %s2871_s21  ;;  %s2875_s26 = sshll.u32 %s3000_s30, 4  ;;  %s2876_s26 = int_to_ptr.vmem [resolvable:$false] %s2875_s26 }
 0x621   : > { %s2877_s0 = scalar_lea.vmem %s2876_s26, 2048  ;;  %p2878_p2 = scmp.lt.s32.totalorder %s3527_s27, %s2876_s26 }
 0x622   : > { %p2873_p0 = pnand %p2872_p13, %p2455_p12  ;;  %p2879_p3 = scmp.lt.s32.totalorder %s2877_s0, %s2871_s21 }
 0x624   : > { %p2874_p1 = pneg %p2873_p0  ;;  %p2880_p4 = por %p2879_p3, %p2878_p2 }
 0x626   : > { %p2881_p7 = pnand %p2880_p4, %p2874_p1 }
 0x628   : > { %2884 = shalt.err (!%p2881_p7)
}
 0x629   : > { %s2885_s18 = scalar_lea.hbm %s3524_s29, %s3514_s23  ;;  %s2889_s16 = scalar_lea.hbm %s3708_s14, 3200 }
 0x62a   : > { %p2886_p8 = scmp.ne.s32.totalorder %s3524_s29, %s2885_s18  ;;  %p2890_p11 = scmp.lt.s32.totalorder %s3524_s29, %s3708_s14 }
 0x62b   : > { %p2891_p13 = scmp.lt.s32.totalorder %s2889_s16, %s2885_s18 }
 0x62c   : > { %p2887_p9 = pnand %p2886_p8, %p2455_p12 }
 0x62d   : > { %p2892_p0 = por %p2891_p13, %p2890_p11 }
 0x62e   : > { %p2888_p10 = pneg %p2887_p9 }
 0x630   : > { %p2893_p1 = pnand %p2892_p0, %p2888_p10 }
 0x632   : > { %2896 = shalt.err (!%p2893_p1)
}
 0x633   : > { %s3001_s0 = smov 128   ;;  %s3002_s21 = smov 8  }
 0x634   : > { %s3732_s1 = scalar_lea.sflag [#allocation3], %s3266_s15 }
 0x635   : > { %2075 = dma.vmem_to_hbm [thread:$0]  (%p2455_p12), %s3527_s27, %s3514_s23, %s3524_s29, %s3732_s1, %s3001_s0, %s3001_s0, %s3002_s21  }
 0x636 PF: > { %2078 = sbr.rel (!%p3121_p5) target bundleno = 1639 (0x667), region = 84  ;;  %s2080_s18 = ssub.s32 (%p3121_p5), 25, %s3135_s17 }
 0x637   : > { %s2626_s20 = smul.u32 (%p3121_p5), 192, %s3104_s22  ;;  %p2081_p2 = scmp.lt.s32.totalorder (%p3121_p5), %s2080_s18, 8 }
 0x638   : > { %s3733_s30 = sld [smem:[#allocation15_spill]] (%p3121_p5) }
 0x63b   : > { %s3750_s18 = smov (!%p2081_p2, %s2080_s18), 8 }
 0x63c   : > { %s2462_s2 = smul.u32 384, %s3750_s18 }
 0x63e   : > { %s3561_s26 = scalar_lea.vmem %s3733_s30, %s2626_s20   ;;  %p2466_p3 = scmp.eq.s32.totalorder %s2462_s2, 0 }
 0x63f   : > { %s3567_s1 = sshrl.u32 (!%p2466_p3), %s3750_s18, 3 }
 0x640   : > { %2091 = sbr.rel (%p2466_p3) target bundleno = 1639 (0x667), region = 88  ;;  %p2467_p5 = scmp.le.s32.totalorder (!%p2466_p3), %s3567_s1, 0 }
 0x645   : > { %2269 = sbr.rel (%p2467_p5) target bundleno = 1623 (0x657), region = 155  ;;  %s3734_s22 = smov (!%p2467_p5), %s3561_s26 }
 0x646   : > { %s3735_s28 = smov (!%p2467_p5), %s3282_s25  ;;  %s3576_s17 = smov (!%p2467_p5), 0  }
 0x647   : > { %s3578_s15 = smov (!%p2467_p5), 0  }
 0x64a LB: >> { %v2104_v18 = vld [vmem:[%s2971_s28] sm:$0xff]  ;;  %v2106_v19 = vld [vmem:[%s2971_s28 + $0x18] sm:$0xff]  ;;  %v2108_v20 = vld [vmem:[%s2971_s28 + $0x30] sm:$0xff]  ;;  %s2152_s2 = sadd.s32 1, %s2975_s17  ;;  %s2098_s15 = sadd.s32 1, %s2979_s15   ;;  %s2979_s15 = sphi %s3578_s15, %s2098_s15   ;;  %s2975_s17 = sphi %s3576_s17, %s3737_s17   ;;  %s2971_s28 = sphi %s3735_s28, %s2157_s28   ;;  %s2967_s22 = sphi %s3734_s22, %s3736_s22  }
 0x64b   : >> { %2105 = vst [vmem:[%s2967_s22] sm:$0xff] %v2104_v18  ;;  %2107 = vst [vmem:[%s2967_s22 + $0x18] sm:$0xff] %v2106_v19  ;;  %v2110_v21 = vld [vmem:[%s2971_s28 + $0x48] sm:$0xff]  ;;  %v2112_v22 = vld [vmem:[%s2971_s28 + $0x60] sm:$0xff]  ;;  %p2153_p12 = scmp.ge.s32.totalorder %s2152_s2, %s3567_s1  ;;  %p2097_p4 = scmp.ge.s32.totalorder %s2098_s15, %s3567_s1 }
 0x64c   : >> { %2109 = vst [vmem:[%s2967_s22 + $0x30] sm:$0xff] %v2108_v20  ;;  %v2114_v24 = vld [vmem:[%s2971_s28 + $0x78] sm:$0xff]  ;;  %2111 = vst [vmem:[%s2967_s22 + $0x48] sm:$0xff] %v2110_v21  ;;  %v2116_v25 = vld [vmem:[%s2971_s28 + $0x90] sm:$0xff] }
 0x64d   : >> { %2113 = vst [vmem:[%s2967_s22 + $0x60] sm:$0xff] %v2112_v22  ;;  %2115 = vst [vmem:[%s2967_s22 + $0x78] sm:$0xff] %v2114_v24  ;;  %v2118_v26 = vld [vmem:[%s2971_s28 + $0xa8] sm:$0xff]  ;;  %v2122_v28 = vld [vmem:[%s2971_s28 + $0x20] sm:$0xff]  ;;  %s3752_s2 = smov (%p2153_p12, %s2152_s2), 0 }
 0x64e   : >> { %v2120_v27 = vld [vmem:[%s2971_s28 + $0x8] sm:$0xff]  ;;  %2117 = vst [vmem:[%s2967_s22 + $0x90] sm:$0xff] %v2116_v25  ;;  %2119 = vst [vmem:[%s2967_s22 + $0xa8] sm:$0xff] %v2118_v26  ;;  %v2124_v23 = vld [vmem:[%s2971_s28 + $0x38] sm:$0xff]  ;;  %s2155_s23 = smul.u32 192, %s3752_s2  ;;  %s3737_s17 = smov %s3752_s2 }
 0x64f   : >> { %2121 = vst [vmem:[%s2967_s22 + $0x8] sm:$0xff] %v2120_v27  ;;  %v2126_v29 = vld [vmem:[%s2971_s28 + $0x50] sm:$0xff]  ;;  %2123 = vst [vmem:[%s2967_s22 + $0x20] sm:$0xff] %v2122_v28  ;;  %v2128_v6 = vld [vmem:[%s2971_s28 + $0x68] sm:$0xff] }
 0x650   : >> { %2125 = vst [vmem:[%s2967_s22 + $0x38] sm:$0xff] %v2124_v23  ;;  %2127 = vst [vmem:[%s2967_s22 + $0x50] sm:$0xff] %v2126_v29  ;;  %v2130_v30 = vld [vmem:[%s2971_s28 + $0x80] sm:$0xff]  ;;  %v2132_v31 = vld [vmem:[%s2971_s28 + $0x98] sm:$0xff]  ;;  %s2158_s29 = scalar_lea.vmem %s3561_s26, %s2155_s23  }
 0x651   : >> { %2129 = vst [vmem:[%s2967_s22 + $0x68] sm:$0xff] %v2128_v6  ;;  %2131 = vst [vmem:[%s2967_s22 + $0x80] sm:$0xff] %v2130_v30  ;;  %v2134_v32 = vld [vmem:[%s2971_s28 + $0xb0] sm:$0xff]  ;;  %v2138_v34 = vld [vmem:[%s2971_s28 + $0x28] sm:$0xff] }
 0x652   : >> { %2133 = vst [vmem:[%s2967_s22 + $0x98] sm:$0xff] %v2132_v31  ;;  %v2136_v33 = vld [vmem:[%s2971_s28 + $0x10] sm:$0xff]  ;;  %2135 = vst [vmem:[%s2967_s22 + $0xb0] sm:$0xff] %v2134_v32  ;;  %v2140_v36 = vld [vmem:[%s2971_s28 + $0x40] sm:$0xff]  ;;  %2100 = sbr.rel (!%p2097_p4) target bundleno = 1610 (0x64a), region = 161 }
 0x653   : >> { %2137 = vst [vmem:[%s2967_s22 + $0x10] sm:$0xff] %v2136_v33  ;;  %2139 = vst [vmem:[%s2967_s22 + $0x28] sm:$0xff] %v2138_v34  ;;  %v2142_v37 = vld [vmem:[%s2971_s28 + $0x58] sm:$0xff]  ;;  %v2144_v35 = vld [vmem:[%s2971_s28 + $0x70] sm:$0xff] }
 0x654   : >> { %2141 = vst [vmem:[%s2967_s22 + $0x40] sm:$0xff] %v2140_v36  ;;  %2143 = vst [vmem:[%s2967_s22 + $0x58] sm:$0xff] %v2142_v37  ;;  %v2146_v38 = vld [vmem:[%s2971_s28 + $0x88] sm:$0xff]  ;;  %v2148_v39 = vld [vmem:[%s2971_s28 + $0xa0] sm:$0xff] }
 0x655   : >> { %2145 = vst [vmem:[%s2967_s22 + $0x70] sm:$0xff] %v2144_v35  ;;  %v2150_v40 = vld [vmem:[%s2971_s28 + $0xb8] sm:$0xff]  ;;  %s2157_s28 = scalar_lea.vmem %s3282_s25, %s2155_s23 [#allocation4]   ;;  %2147 = vst [vmem:[%s2967_s22 + $0x88] sm:$0xff] %v2146_v38 }
 0x656   : >> { %2149 = vst [vmem:[%s2967_s22 + $0xa0] sm:$0xff] %v2148_v39  ;;  %2151 = vst [vmem:[%s2967_s22 + $0xb8] sm:$0xff] %v2150_v40  ;;  %s3736_s22 = smov %s2158_s29 }
 0x657 PF: > { %s3656_s27 = sand.u32 7, %s3750_s18   ;;  %s2469_s0 = smul.u32 192, %s3567_s1 }
 0x658   : > { %p2471_p7 = scmp.le.s32.totalorder %s3656_s27, 0 }
 0x659   : > { %s3660_s21 = scalar_lea.vmem %s3282_s25, %s2469_s0 [#allocation4]   ;;  %s3663_s20 = scalar_lea.vmem %s3561_s26, %s2469_s0  }
 0x65a   : > { %2283 = sbr.rel (%p2471_p7) target bundleno = 1639 (0x667), region = 166  ;;  %s3738_s24 = smov (!%p2471_p7), %s3663_s20 }
 0x65b   : > { %s2985_s16 = smov (!%p2471_p7), %s3660_s21   ;;  %s2989_s30 = smov (!%p2471_p7), 0  }
 0x65c   : > { %s2993_s22 = smov (!%p2471_p7), 0  }
 0x65f LB: >> { %v2175_v42 = vld [vmem:[%s2987_s16] sm:$0xff]  ;;  %v2177_v43 = vld [vmem:[%s2987_s16 + $0x8] sm:$0xff]  ;;  %v2179_v44 = vld [vmem:[%s2987_s16 + $0x10] sm:$0xff]  ;;  %s2181_s25 = sadd.s32 1, %s2991_s30  ;;  %s2169_s22 = sadd.s32 1, %s2995_s22   ;;  %s2995_s22 = sphi %s2993_s22, %s2169_s22   ;;  %s2991_s30 = sphi %s2989_s30, %s2990_s30   ;;  %s2987_s16 = sphi %s2985_s16, %s2186_s16   ;;  %s2983_s24 = sphi %s3738_s24, %s2187_s24  }
 0x660   : >> { %2176 = vst [vmem:[%s2983_s24] sm:$0xff] %v2175_v42  ;;  %2178 = vst [vmem:[%s2983_s24 + $0x8] sm:$0xff] %v2177_v43  ;;  %p2182_p8 = scmp.ge.s32.totalorder %s2181_s25, %s3656_s27  ;;  %p2168_p9 = scmp.ge.s32.totalorder %s2169_s22, %s3656_s27 }
 0x661   : >> { %2180 = vst [vmem:[%s2983_s24 + $0x10] sm:$0xff] %v2179_v44 }
 0x662   : >> { %s3754_s25 = smov (%p2182_p8, %s2181_s25), 0  ;;  %2171 = sbr.rel (!%p2168_p9) target bundleno = 1631 (0x65f), region = 172 }
 0x663   : >> { %s2184_s18 = smul.u32 24, %s3754_s25  ;;  %s2990_s30 = smov %s3754_s25  }
 0x665   : >> { %s2186_s16 = scalar_lea.vmem %s3660_s21, %s2184_s18 [#allocation4]   ;;  %s2187_s24 = scalar_lea.vmem %s3663_s20, %s2184_s18  }
 0x667 PF: > { %s3739_s26 = sld [smem:[#allocation8_spill]] }
 0x668   : > { %s3740_s1 = sld [smem:[#allocation6_spill]] }
 0x66d   : > { %p2632_p10 = scmp.ge.s32.totalorder %s3739_s26, 2 }
 0x66e   : > { %s2199_s17 = sand.u32 1, %s3740_s1  }
 0x66f   : > { %p2629_p11 = pnand %p2632_p10, %p3125_p6  ;;  %s2200_s15 = scalar_lea.sflag [#allocation3], %s2199_s17 }
 0x671   : > { %p2630_p13 = pneg %p2629_p11 }
 0x673   : > { %2946 = dma.done.wait (%p2630_p13), %s2200_s15, 1024  }
 0x674   : > { %2948 = vsyncadd (%p2630_p13), %s2200_s15, 4294966272  ;;  %s3742_s21 = sld [smem:[#allocation9_spill]]  ;;  %s3745_s18 = smov %s2955_s19 }
 0x675   : > { %s3743_s2 = sld [smem:[#allocation7_spill]] }
 0x676   : > { %s3744_s20 = sld [smem:[#allocation10_spill]] }
 0x67a   : > { %p26_p0 = scmp.ge.s32.totalorder %s3742_s21, 6  }
 0x67b   : > { %s3746_s19 = smov %s3743_s2 }
 0x67c   :  { %28 = sbr.rel (!%p26_p0) target bundleno = 8 (0x8), region = 183 }
 0x681   :  { %2212 = vsyncpa [#allocation3], 1 }
 0x682   :  { %2214 = vsyncpa [#allocation3 + $0x1], 1 }

</bundles_post_ra>
